<compile_context>
chip_gen: v7x
topology: tpu7x:2x2x1
jax: 0.10.0
libtpu: 0.0.40
codegen_flags: <defaults>
</compile_context>

<pallas_src>
import functools
import numpy as np
import jax
import jax.numpy as jnp
from jax.experimental import pallas as pl
from jax.experimental.pallas import tpu as pltpu

# --------------------------------------------------------------------------
# cfg (standard Faster R-CNN RPN training config values)
# --------------------------------------------------------------------------
RPN_NEGATIVE_OVERLAP = 0.3
RPN_POSITIVE_OVERLAP = 0.7
RPN_CLOBBER_POSITIVES = False
RPN_FG_FRACTION = 0.5
RPN_BATCHSIZE = 256
RPN_BBOX_INSIDE_WEIGHTS = (1.0, 1.0, 1.0, 1.0)
RPN_POSITIVE_WEIGHT = -1.0
ALLOWED_BORDER = 0.0


# --------------------------------------------------------------------------
# anchor generation (deterministic parameter setup, plain numpy)
# --------------------------------------------------------------------------
def _whctrs(anchor):
    w = anchor[2] - anchor[0] + 1
    h = anchor[3] - anchor[1] + 1
    x_ctr = anchor[0] + 0.5 * (w - 1)
    y_ctr = anchor[1] + 0.5 * (h - 1)
    return w, h, x_ctr, y_ctr


def _mkanchors(ws, hs, x_ctr, y_ctr):
    ws = ws[:, np.newaxis]
    hs = hs[:, np.newaxis]
    return np.hstack((x_ctr - 0.5 * (ws - 1), y_ctr - 0.5 * (hs - 1),
                      x_ctr + 0.5 * (ws - 1), y_ctr + 0.5 * (hs - 1)))


def _ratio_enum(anchor, ratios):
    w, h, x_ctr, y_ctr = _whctrs(anchor)
    size = w * h
    size_ratios = size / ratios
    ws = np.round(np.sqrt(size_ratios))
    hs = np.round(ws * ratios)
    return _mkanchors(ws, hs, x_ctr, y_ctr)


def _scale_enum(anchor, scales):
    w, h, x_ctr, y_ctr = _whctrs(anchor)
    ws = w * scales
    hs = h * scales
    return _mkanchors(ws, hs, x_ctr, y_ctr)


def generate_anchors(base_size=16, ratios=np.array([0.5, 1, 2]),
                     scales=2 ** np.arange(3, 6)):
    base_anchor = np.array([1, 1, base_size, base_size], dtype=np.float64) - 1
    ratio_anchors = _ratio_enum(base_anchor, ratios)
    anchors = np.vstack([_scale_enum(ratio_anchors[i, :], scales)
                         for i in range(ratio_anchors.shape[0])])
    return anchors


# --------------------------------------------------------------------------
# Single fused Pallas kernel:
#   per batch element (tube + rois batches concatenated):
#     IoU overlaps -> max / argmax -> labels + bbox regression targets
# Inputs:
#   anchor_ref: (16, Npad)  rows: 0-3 x1,y1,x2,y2 | 4 inside | 5 area
#                            6 ex_cx | 7 ex_cy | 8 1/ex_w | 9 1/ex_h | rest 0
#   gt_sb_ref:  (B, Gpad, 8) cols 0-3 coords, col 4 valid (sublane = gt index)
#   gt_ln_ref:  (B, 8, Gpad) rows 0-3 coords   (lane = gt index, for MXU dot)
# Output:
#   out_ref:    (B, 8, Npad) rows 0-3 targets (dx,dy,dw,dh), row 4 labels
# --------------------------------------------------------------------------
def anchor_target_kernel(anchor_ref, gt_sb_ref, gt_ln_ref, out_ref):
    af = anchor_ref[...]                               # (16, Npad)
    ax1 = af[0:1, :]
    ay1 = af[1:2, :]
    ax2 = af[2:3, :]
    ay2 = af[3:4, :]
    inside = af[4:5, :] > 0.5                          # (1, Npad) bool
    a_area = af[5:6, :]
    ex_cx = af[6:7, :]
    ex_cy = af[7:8, :]
    inv_w = af[8:9, :]
    inv_h = af[9:10, :]

    npad = af.shape[1]
    b_total = gt_sb_ref.shape[0]
    gpad = gt_sb_ref.shape[1]
    zeros3 = jnp.zeros((3, npad), jnp.float32)         # hoisted out of the loop

    for b in range(b_total):                           # tiny static batch; unrolled
        gt = gt_sb_ref[b]                              # (Gpad, 8)
        gx1 = gt[:, 0:1]
        gy1 = gt[:, 1:2]
        gx2 = gt[:, 2:3]
        gy2 = gt[:, 3:4]
        gv = gt[:, 4:5] > 0.5                          # (Gpad, 1) bool

        # ---- pairwise IoU: (Gpad, Npad), divide on the EUP ----------------
        iw = jnp.maximum(jnp.minimum(ax2, gx2) - jnp.maximum(ax1, gx1) + 1.0, 0.0)
        ih = jnp.maximum(jnp.minimum(ay2, gy2) - jnp.maximum(ay1, gy1) + 1.0, 0.0)
        inter = iw * ih
        g_area = (gx2 - gx1 + 1.0) * (gy2 - gy1 + 1.0)
        ov = inter * pl.reciprocal(a_area + g_area - inter, approx=True)

        valid = jnp.logical_and(gv, inside)            # (Gpad, Npad)
        ov = jnp.where(valid, ov, -1.0)                # outside anchors / pad gt -> -1

        # per-anchor max / argmax over gt
        anchor_max = jnp.max(ov, axis=0, keepdims=True)                  # (1, Npad)
        gt_iota = jax.lax.broadcasted_iota(jnp.int32, (gpad, npad), 0)
        argmax = jnp.min(jnp.where(ov == anchor_max, gt_iota, gpad),
                         axis=0, keepdims=True)                          # (1, Npad)

        # per-gt max over (inside) anchors
        gt_max = jnp.max(ov, axis=1, keepdims=True)                      # (Gpad, 1)
        gt_max = jnp.where(gt_max == 0.0, 1e-5, gt_max)
        keep = jnp.sum(jnp.where(jnp.logical_and(ov == gt_max, valid), 1.0, 0.0),
                       axis=0, keepdims=True)                            # (1, Npad)

        # ---- labels --------------------------------------------------------
        labels = jnp.full((1, npad), -1.0, dtype=jnp.float32)
        labels = jnp.where(anchor_max < RPN_NEGATIVE_OVERLAP, 0.0, labels)
        labels = jnp.where(keep > 0.0, 1.0, labels)
        labels = jnp.where(anchor_max >= RPN_POSITIVE_OVERLAP, 1.0, labels)
        labels = jnp.where(inside, labels, -1.0)                         # _unmap fill=-1

        # ---- matched-gt gather on the MXU ----------------------------------
        onehot = (gt_iota == argmax).astype(jnp.float32)                 # (Gpad, Npad)
        gtc = gt_ln_ref[b]                                               # (8, Gpad)
        matched = jnp.dot(gtc, onehot,
                          preferred_element_type=jnp.float32)            # (8, Npad)
        sx1 = matched[0:1, :]
        sy1 = matched[1:2, :]
        sx2 = matched[2:3, :]
        sy2 = matched[3:4, :]

        # ---- bbox regression targets (bbox_transform_batch) ----------------
        g_w = sx2 - sx1 + 1.0
        g_h = sy2 - sy1 + 1.0
        g_cx = sx1 + 0.5 * g_w
        g_cy = sy1 + 0.5 * g_h

        dx = (g_cx - ex_cx) * inv_w
        dy = (g_cy - ex_cy) * inv_h
        dw = jnp.log(g_w * inv_w)
        dh = jnp.log(g_h * inv_h)

        targets = jnp.where(inside,
                            jnp.concatenate([dx, dy, dw, dh], axis=0),
                            0.0)                                         # _unmap fill=0

        out_ref[b] = jnp.concatenate([targets, labels, zeros3], axis=0)  # (8, Npad)


def run_anchor_target_kernel(anchor_feats, gt_sb, gt_ln):
    b_total = gt_sb.shape[0]
    npad = anchor_feats.shape[1]
    return pl.pallas_call(
        anchor_target_kernel,
        out_shape=jax.ShapeDtypeStruct((b_total, 8, npad), jnp.float32),
        in_specs=[pl.BlockSpec(memory_space=pltpu.MemorySpace.VMEM),
                  pl.BlockSpec(memory_space=pltpu.MemorySpace.VMEM),
                  pl.BlockSpec(memory_space=pltpu.MemorySpace.VMEM)],
        out_specs=pl.BlockSpec(memory_space=pltpu.MemorySpace.VMEM),
    )(anchor_feats, gt_sb, gt_ln)


# --------------------------------------------------------------------------
# fg/bg subsampling (plain JAX glue, vectorized over the batch, sort-free).
# TODO(synk): original uses np.random.permutation with global numpy RNG state,
# which cannot be reproduced bit-exactly; replaced with a deterministic
# jax.random selection that disables the same *number* of fg/bg anchors.
# --------------------------------------------------------------------------
def subsample_all(labels, key, num_fg, rpn_batchsize):
    # labels: (B, N) float32 in {-1, 0, 1}
    B, N = labels.shape
    k_fg, k_bg = jax.random.split(key)
    rnd_fg = jax.random.uniform(k_fg, (B, N))
    rnd_bg = jax.random.uniform(k_bg, (B, N))

    def ranks(score):
        # count-of-larger-keys (no sort); fine for N ~ few hundred.
        # TODO(synk): switch to jax.lax.top_k for realistic RPN sizes (N >> 1k).
        return jnp.sum(score[:, None, :] > score[:, :, None], axis=-1)

    # fg: keep at most num_fg positives per batch element
    fg_mask = labels == 1.0
    fg_rank = ranks(jnp.where(fg_mask, rnd_fg, -1.0))
    labels = jnp.where(fg_mask & (fg_rank >= num_fg), -1.0, labels)

    # bg: keep at most (RPN_BATCHSIZE - #fg_kept) negatives per batch element
    num_bg = rpn_batchsize - jnp.sum(labels == 1.0, axis=1)
    bg_mask = labels == 0.0
    bg_rank = ranks(jnp.where(bg_mask, rnd_bg, -1.0))
    labels = jnp.where(bg_mask & (bg_rank >= num_bg[:, None]), -1.0, labels)
    return labels


# --------------------------------------------------------------------------
# full forward (parameter setup / reshapes / weights in fused JAX glue,
# hot path in a single Pallas kernel)
# --------------------------------------------------------------------------
def anchor_target_forward(inputs, sample_key, feat_stride, scales, ratios):
    rpn_cls_score, gt_tubes, im_info, gt_rois_in, num_boxes, time_limit = inputs
    # TODO(synk): num_boxes / time_limit are accepted but unused — the source of
    # bbox_overlaps_time/bbox_overlaps_rois was not provided; spatial IoU used.
    del num_boxes, time_limit

    gt_rois = jnp.transpose(gt_rois_in, (1, 0, 2))      # matches .permute(1, 0, 2)
    H, W = int(rpn_cls_score.shape[2]), int(rpn_cls_score.shape[3])
    Bt = int(gt_tubes.shape[0])
    Br = int(gt_rois.shape[0])

    # ---- anchors + hoisted per-anchor features (numpy, trace-time) --------
    anchors_np = generate_anchors(scales=np.array(scales),
                                  ratios=np.array(ratios)).astype(np.float32)
    A = anchors_np.shape[0]
    shift_x = np.arange(0, W) * feat_stride
    shift_y = np.arange(0, H) * feat_stride
    sx, sy = np.meshgrid(shift_x, shift_y)
    shifts = np.vstack((sx.ravel(), sy.ravel(),
                        sx.ravel(), sy.ravel())).transpose().astype(np.float32)
    K = shifts.shape[0]
    all_anchors = (anchors_np.reshape(1, A, 4) +
                   shifts.reshape(K, 1, 4)).reshape(K * A, 4)
    N = K * A
    Npad = int(np.ceil(N / 128.0) * 128)
    pad = Npad - N
    dummy = np.tile(np.array([[0.0, 0.0, 15.0, 15.0]], np.float32), (pad, 1))
    anchors_pad = np.concatenate([all_anchors, dummy], axis=0)   # (Npad, 4)

    feats_np = np.zeros((16, Npad), np.float32)
    feats_np[0:4, :] = anchors_pad.T
    aw = anchors_pad[:, 2] - anchors_pad[:, 0] + 1.0
    ah = anchors_pad[:, 3] - anchors_pad[:, 1] + 1.0
    feats_np[5, :] = aw * ah                       # anchor area
    feats_np[6, :] = anchors_pad[:, 0] + 0.5 * aw  # ex_ctr_x
    feats_np[7, :] = anchors_pad[:, 1] + 0.5 * ah  # ex_ctr_y
    feats_np[8, :] = 1.0 / aw                      # 1/ex_w
    feats_np[9, :] = 1.0 / ah                      # 1/ex_h

    # inside-image mask depends on (traced) im_info
    aa = jnp.asarray(all_anchors)
    im_h = jnp.floor(im_info[0, 0])                # long(im_info[0][0])
    im_w = jnp.floor(im_info[0, 1])                # long(im_info[0][1])
    inside = ((aa[:, 0] >= -ALLOWED_BORDER) &
              (aa[:, 1] >= -ALLOWED_BORDER) &
              (aa[:, 2] < im_w + ALLOWED_BORDER) &
              (aa[:, 3] < im_h + ALLOWED_BORDER)).astype(jnp.float32)
    inside_pad = jnp.concatenate([inside, jnp.zeros((pad,), jnp.float32)])
    anchor_feats = jnp.asarray(feats_np).at[4, :].set(inside_pad)

    # ---- pack gt (tube + rois concatenated along batch) --------------------
    sel = jnp.array([0, 1, 3, 4])
    tube_gt = gt_tubes[:, :, sel]                  # (Bt, Gt, 4) spatial box
    rois_gt = gt_rois[:, :, sel]                   # (Br, Gr, 4) spatial box
    Gt = int(tube_gt.shape[1])
    Gr = int(rois_gt.shape[1])
    Gpad = int(np.ceil(max(Gt, Gr) / 8.0) * 8)

    def pack_gt(g):
        B, G, _ = g.shape
        g = g.astype(jnp.float32)
        sb = jnp.zeros((B, Gpad, 8), jnp.float32)
        sb = sb.at[:, :G, 0:4].set(g)
        sb = sb.at[:, :G, 4].set(1.0)
        ln = jnp.zeros((B, 8, Gpad), jnp.float32)
        ln = ln.at[:, 0:4, :G].set(jnp.transpose(g, (0, 2, 1)))
        return sb, ln

    tube_sb, tube_ln = pack_gt(tube_gt)
    rois_sb, rois_ln = pack_gt(rois_gt)
    gt_sb = jnp.concatenate([tube_sb, rois_sb], axis=0)
    gt_ln = jnp.concatenate([tube_ln, rois_ln], axis=0)

    # ---- single fused kernel launch ----------------------------------------
    out = run_anchor_target_kernel(anchor_feats, gt_sb, gt_ln)   # (Bt+Br, 8, Npad)
    tube_out = out[:Bt]
    rois_out = out[Bt:Bt + Br]

    tube_labels = tube_out[:, 4, :N]
    tube_targets = tube_out[:, 0:4, :N]
    rois_labels = rois_out[:, 4, :N]
    rois_targets = rois_out[:, 0:4, :N]

    # ---- fg/bg subsampling --------------------------------------------------
    key_t, key_r = jax.random.split(sample_key)
    num_fg = int(RPN_FG_FRACTION * RPN_BATCHSIZE)
    tube_labels = subsample_all(tube_labels, key_t, num_fg, RPN_BATCHSIZE)
    rois_labels = subsample_all(rois_labels, key_r, num_fg, RPN_BATCHSIZE)

    # ---- weights (plain JAX; fused by XLA) ----------------------------------
    assert RPN_POSITIVE_WEIGHT < 0
    # denominator clamped to >=1 to avoid inf when no labeled anchors exist
    tube_num_ex = jnp.maximum(
        jnp.sum((tube_labels[0] >= 0).astype(jnp.float32)), 1.0)      # batch 0 (as original)
    rois_num_ex = jnp.maximum(
        jnp.sum((rois_labels[Br - 1] >= 0).astype(jnp.float32)), 1.0)  # leftover i (as original)
    tube_pos_w = 1.0 / tube_num_ex
    tube_neg_w = tube_pos_w
    rois_pos_w = 1.0 / rois_num_ex
    rois_neg_w = rois_pos_w

    inside_w = jnp.float32(RPN_BBOX_INSIDE_WEIGHTS[0])
    tube_inw = jnp.where(tube_labels == 1.0, inside_w, 0.0)
    tube_outw = jnp.where(tube_labels == 1.0, tube_pos_w,
                          jnp.where(tube_labels == 0.0, tube_neg_w, 0.0))
    rois_inw = jnp.where(rois_labels == 1.0, inside_w, 0.0)
    rois_outw = jnp.where(rois_labels == 1.0, rois_pos_w,
                          jnp.where(rois_labels == 0.0, rois_neg_w, 0.0))

    # ---- final PyTorch layouts ----------------------------------------------
    def finalize(labels, targets, inw, outw, B):
        lab = labels.reshape(B, H, W, A).transpose(0, 3, 1, 2).reshape(B, 1, A * H, W)
        tgt = targets.transpose(0, 2, 1).reshape(B, H, W, A * 4).transpose(0, 3, 1, 2)

        def wexp(w):
            w4 = jnp.broadcast_to(w[:, :, None], (B, N, 4))
            return w4.reshape(B, H, W, 4 * A).transpose(0, 3, 1, 2)

        return lab, tgt, wexp(inw), wexp(outw)

    t_lab, t_tgt, t_inw, t_outw = finalize(tube_labels, tube_targets,
                                           tube_inw, tube_outw, Bt)
    r_lab, r_tgt, r_inw, r_outw = finalize(rois_labels, rois_targets,
                                           rois_inw, rois_outw, Br)
    r_tgt = r_tgt.reshape(-1, 7, 7)
    r_inw = r_inw.reshape(-1, 7, 7)
    r_outw = r_outw.reshape(-1, 7, 7)

    return [t_lab, t_tgt, t_inw, t_outw, r_lab, r_tgt, r_inw, r_outw]


# --------------------------------------------------------------------------
# main
# --------------------------------------------------------------------------
if __name__ == "__main__":
    key = jax.random.PRNGKey(0)
    k_cls, k_tube, k_roi, k_sample = jax.random.split(key, 4)

    feat_stride = 16
    scales = [2, 4]
    ratios = [0.5, 1, 2]
    H = W = 7                      # feature map 7x7 -> image 112x112
    Bt, Gt = 2, 3                  # gt tube batch / tubes per batch
    Br, Gr = 2, 3                  # gt rois batch / rois per batch

    rpn_cls_score = jax.random.normal(k_cls, (Bt, 12, H, W), jnp.float32)
    im_info = jnp.array([[112.0, 112.0, 1.0]], jnp.float32)

    def make_boxes(k, B, G):
        kx, ky, kw, kh = jax.random.split(k, 4)
        x1 = jax.random.uniform(kx, (B, G), minval=0.0, maxval=50.0)
        y1 = jax.random.uniform(ky, (B, G), minval=0.0, maxval=50.0)
        bw = jax.random.uniform(kw, (B, G), minval=20.0, maxval=55.0)
        bh = jax.random.uniform(kh, (B, G), minval=20.0, maxval=55.0)
        return x1, y1, x1 + bw, y1 + bh

    tx1, ty1, tx2, ty2 = make_boxes(k_tube, Bt, Gt)
    # gt_tubes: (Bt, Gt, 7) = (x1, y1, t1, x2, y2, t2, label)
    gt_tubes = jnp.stack(
        [tx1, ty1, jnp.zeros_like(tx1), tx2, ty2,
         jnp.full_like(tx1, 15.0), jnp.ones_like(tx1)], axis=-1)

    rx1, ry1, rx2, ry2 = make_boxes(k_roi, Br, Gr)
    # gt_rois (pre-permute input): (Gr, Br, 5) = (x1, y1, t, x2, y2)
    gt_rois_b = jnp.stack([rx1, ry1, jnp.zeros_like(rx1), rx2, ry2], axis=-1)
    gt_rois_in = jnp.transpose(gt_rois_b, (1, 0, 2))

    num_boxes = jnp.array([Gt, Gt], jnp.int32)
    time_limit = 16

    forward = jax.jit(functools.partial(anchor_target_forward,
                                        feat_stride=feat_stride,
                                        scales=scales, ratios=ratios))
    outs = forward(
        (rpn_cls_score, gt_tubes, im_info, gt_rois_in, num_boxes, time_limit),
        k_sample)

    jax.block_until_ready(outs)
    print("KERNEL_OK")
</pallas_src>

<mosaic_0001>
module attributes {stable_mosaic.version = 11 : i64} {
  func.func @anchor_target_kernel(%arg0: memref<16x384xf32, #tpu.memory_space<vmem>>, %arg1: memref<4x8x8xf32, #tpu.memory_space<vmem>>, %arg2: memref<4x8x8xf32, #tpu.memory_space<vmem>>, %arg3: memref<4x8x384xf32, #tpu.memory_space<vmem>>) attributes {dimension_semantics = [], scalar_prefetch = 0 : i64, scratch_operands = 0 : i64, tpu.core_type = #tpu.core_type<tc>} {
    %c0 = arith.constant 0 : index
    %c0_0 = arith.constant 0 : index
    %0 = vector.load %arg0[%c0, %c0_0] : memref<16x384xf32, #tpu.memory_space<vmem>>, vector<16x384xf32>
    %1 = vector.extract_strided_slice %0 {offsets = [0, 0], sizes = [1, 384], strides = [1, 1]} : vector<16x384xf32> to vector<1x384xf32>
    %2 = vector.extract_strided_slice %0 {offsets = [1, 0], sizes = [1, 384], strides = [1, 1]} : vector<16x384xf32> to vector<1x384xf32>
    %3 = vector.extract_strided_slice %0 {offsets = [2, 0], sizes = [1, 384], strides = [1, 1]} : vector<16x384xf32> to vector<1x384xf32>
    %4 = vector.extract_strided_slice %0 {offsets = [3, 0], sizes = [1, 384], strides = [1, 1]} : vector<16x384xf32> to vector<1x384xf32>
    %5 = vector.extract_strided_slice %0 {offsets = [4, 0], sizes = [1, 384], strides = [1, 1]} : vector<16x384xf32> to vector<1x384xf32>
    %cst = arith.constant 5.000000e-01 : f32
    %6 = vector.broadcast %cst : f32 to vector<1x384xf32>
    %7 = arith.cmpf ogt, %5, %6 : vector<1x384xf32>
    %8 = vector.extract_strided_slice %0 {offsets = [5, 0], sizes = [1, 384], strides = [1, 1]} : vector<16x384xf32> to vector<1x384xf32>
    %9 = vector.extract_strided_slice %0 {offsets = [6, 0], sizes = [1, 384], strides = [1, 1]} : vector<16x384xf32> to vector<1x384xf32>
    %10 = vector.extract_strided_slice %0 {offsets = [7, 0], sizes = [1, 384], strides = [1, 1]} : vector<16x384xf32> to vector<1x384xf32>
    %11 = vector.extract_strided_slice %0 {offsets = [8, 0], sizes = [1, 384], strides = [1, 1]} : vector<16x384xf32> to vector<1x384xf32>
    %12 = vector.extract_strided_slice %0 {offsets = [9, 0], sizes = [1, 384], strides = [1, 1]} : vector<16x384xf32> to vector<1x384xf32>
    %cst_1 = arith.constant 0.000000e+00 : f32
    %13 = vector.broadcast %cst_1 : f32 to vector<3x384xf32>
    %c0_2 = arith.constant 0 : index
    %c0_3 = arith.constant 0 : index
    %c0_4 = arith.constant 0 : index
    %14 = vector.load %arg1[%c0_2, %c0_3, %c0_4] : memref<4x8x8xf32, #tpu.memory_space<vmem>>, vector<1x8x8xf32>
    %15 = vector.shape_cast %14 : vector<1x8x8xf32> to vector<8x8xf32>
    %16 = vector.extract_strided_slice %15 {offsets = [0, 0], sizes = [8, 1], strides = [1, 1]} : vector<8x8xf32> to vector<8x1xf32>
    %17 = vector.extract_strided_slice %15 {offsets = [0, 1], sizes = [8, 1], strides = [1, 1]} : vector<8x8xf32> to vector<8x1xf32>
    %18 = vector.extract_strided_slice %15 {offsets = [0, 2], sizes = [8, 1], strides = [1, 1]} : vector<8x8xf32> to vector<8x1xf32>
    %19 = vector.extract_strided_slice %15 {offsets = [0, 3], sizes = [8, 1], strides = [1, 1]} : vector<8x8xf32> to vector<8x1xf32>
    %20 = vector.extract_strided_slice %15 {offsets = [0, 4], sizes = [8, 1], strides = [1, 1]} : vector<8x8xf32> to vector<8x1xf32>
    %cst_5 = arith.constant 5.000000e-01 : f32
    %21 = vector.broadcast %cst_5 : f32 to vector<8x1xf32>
    %22 = arith.cmpf ogt, %20, %21 : vector<8x1xf32>
    %23 = vector.broadcast %3 : vector<1x384xf32> to vector<8x384xf32>
    %24 = vector.broadcast %18 : vector<8x1xf32> to vector<8x384xf32>
    %25 = arith.minimumf %23, %24 : vector<8x384xf32>
    %26 = vector.broadcast %1 : vector<1x384xf32> to vector<8x384xf32>
    %27 = vector.broadcast %16 : vector<8x1xf32> to vector<8x384xf32>
    %28 = arith.maximumf %26, %27 : vector<8x384xf32>
    %29 = arith.subf %25, %28 : vector<8x384xf32>
    %cst_6 = arith.constant 1.000000e+00 : f32
    %30 = vector.broadcast %cst_6 : f32 to vector<8x384xf32>
    %31 = arith.addf %29, %30 : vector<8x384xf32>
    %cst_7 = arith.constant 0.000000e+00 : f32
    %32 = vector.broadcast %cst_7 : f32 to vector<8x384xf32>
    %33 = arith.maximumf %31, %32 : vector<8x384xf32>
    %34 = vector.broadcast %4 : vector<1x384xf32> to vector<8x384xf32>
    %35 = vector.broadcast %19 : vector<8x1xf32> to vector<8x384xf32>
    %36 = arith.minimumf %34, %35 : vector<8x384xf32>
    %37 = vector.broadcast %2 : vector<1x384xf32> to vector<8x384xf32>
    %38 = vector.broadcast %17 : vector<8x1xf32> to vector<8x384xf32>
    %39 = arith.maximumf %37, %38 : vector<8x384xf32>
    %40 = arith.subf %36, %39 : vector<8x384xf32>
    %cst_8 = arith.constant 1.000000e+00 : f32
    %41 = vector.broadcast %cst_8 : f32 to vector<8x384xf32>
    %42 = arith.addf %40, %41 : vector<8x384xf32>
    %cst_9 = arith.constant 0.000000e+00 : f32
    %43 = vector.broadcast %cst_9 : f32 to vector<8x384xf32>
    %44 = arith.maximumf %42, %43 : vector<8x384xf32>
    %45 = arith.mulf %33, %44 : vector<8x384xf32>
    %46 = arith.subf %18, %16 : vector<8x1xf32>
    %cst_10 = arith.constant 1.000000e+00 : f32
    %47 = vector.broadcast %cst_10 : f32 to vector<8x1xf32>
    %48 = arith.addf %46, %47 : vector<8x1xf32>
    %49 = arith.subf %19, %17 : vector<8x1xf32>
    %cst_11 = arith.constant 1.000000e+00 : f32
    %50 = vector.broadcast %cst_11 : f32 to vector<8x1xf32>
    %51 = arith.addf %49, %50 : vector<8x1xf32>
    %52 = arith.mulf %48, %51 : vector<8x1xf32>
    %53 = vector.broadcast %8 : vector<1x384xf32> to vector<8x384xf32>
    %54 = vector.broadcast %52 : vector<8x1xf32> to vector<8x384xf32>
    %55 = arith.addf %53, %54 : vector<8x384xf32>
    %56 = arith.subf %55, %45 : vector<8x384xf32>
    %57 = tpu.reciprocal %56 {approx = true} : vector<8x384xf32> -> vector<8x384xf32>
    %58 = arith.mulf %45, %57 : vector<8x384xf32>
    %59 = vector.broadcast %22 : vector<8x1xi1> to vector<8x384xi1>
    %60 = vector.broadcast %7 : vector<1x384xi1> to vector<8x384xi1>
    %61 = arith.andi %59, %60 : vector<8x384xi1>
    %cst_12 = arith.constant -1.000000e+00 : f32
    %62 = vector.broadcast %cst_12 : f32 to vector<8x384xf32>
    %63 = arith.select %61, %58, %62 : vector<8x384xi1>, vector<8x384xf32>
    %cst_13 = arith.constant dense<0xFF800000> : vector<384xf32>
    %64 = vector.multi_reduction <maximumf>, %63, %cst_13 [0] : vector<8x384xf32> to vector<384xf32>
    %65 = vector.shape_cast %64 : vector<384xf32> to vector<1x384xf32>
    %66 = tpu.iota {dimensions = array<i32: 0>} : vector<8x384xi32>
    %67 = vector.broadcast %65 : vector<1x384xf32> to vector<8x384xf32>
    %68 = arith.cmpf oeq, %63, %67 : vector<8x384xf32>
    %c8_i32 = arith.constant 8 : i32
    %69 = vector.broadcast %c8_i32 : i32 to vector<8x384xi32>
    %70 = arith.select %68, %66, %69 : vector<8x384xi1>, vector<8x384xi32>
    %cst_14 = arith.constant dense<2147483647> : vector<384xi32>
    %71 = vector.multi_reduction <minsi>, %70, %cst_14 [0] : vector<8x384xi32> to vector<384xi32>
    %72 = vector.shape_cast %71 : vector<384xi32> to vector<1x384xi32>
    %cst_15 = arith.constant dense<0xFF800000> : vector<8xf32>
    %73 = vector.multi_reduction <maximumf>, %63, %cst_15 [1] : vector<8x384xf32> to vector<8xf32>
    %74 = vector.shape_cast %73 : vector<8xf32> to vector<8x1xf32>
    %cst_16 = arith.constant 0.000000e+00 : f32
    %75 = vector.broadcast %cst_16 : f32 to vector<8x1xf32>
    %76 = arith.cmpf oeq, %74, %75 : vector<8x1xf32>
    %cst_17 = arith.constant 9.99999974E-6 : f32
    %77 = vector.broadcast %cst_17 : f32 to vector<8x1xf32>
    %78 = arith.select %76, %77, %74 : vector<8x1xi1>, vector<8x1xf32>
    %79 = vector.broadcast %78 : vector<8x1xf32> to vector<8x384xf32>
    %80 = arith.cmpf oeq, %63, %79 : vector<8x384xf32>
    %81 = arith.andi %80, %61 : vector<8x384xi1>
    %cst_18 = arith.constant 1.000000e+00 : f32
    %cst_19 = arith.constant 0.000000e+00 : f32
    %82 = vector.broadcast %cst_18 : f32 to vector<8x384xf32>
    %83 = vector.broadcast %cst_19 : f32 to vector<8x384xf32>
    %84 = arith.select %81, %82, %83 : vector<8x384xi1>, vector<8x384xf32>
    %cst_20 = arith.constant dense<0.000000e+00> : vector<384xf32>
    %85 = vector.multi_reduction <add>, %84, %cst_20 [0] : vector<8x384xf32> to vector<384xf32>
    %86 = vector.shape_cast %85 : vector<384xf32> to vector<1x384xf32>
    %cst_21 = arith.constant -1.000000e+00 : f32
    %87 = vector.broadcast %cst_21 : f32 to vector<1x384xf32>
    %cst_22 = arith.constant 3.000000e-01 : f32
    %88 = vector.broadcast %cst_22 : f32 to vector<1x384xf32>
    %89 = arith.cmpf olt, %65, %88 : vector<1x384xf32>
    %cst_23 = arith.constant 0.000000e+00 : f32
    %90 = vector.broadcast %cst_23 : f32 to vector<1x384xf32>
    %91 = arith.select %89, %90, %87 : vector<1x384xi1>, vector<1x384xf32>
    %cst_24 = arith.constant 0.000000e+00 : f32
    %92 = vector.broadcast %cst_24 : f32 to vector<1x384xf32>
    %93 = arith.cmpf ogt, %86, %92 : vector<1x384xf32>
    %cst_25 = arith.constant 1.000000e+00 : f32
    %94 = vector.broadcast %cst_25 : f32 to vector<1x384xf32>
    %95 = arith.select %93, %94, %91 : vector<1x384xi1>, vector<1x384xf32>
    %cst_26 = arith.constant 0.699999988 : f32
    %96 = vector.broadcast %cst_26 : f32 to vector<1x384xf32>
    %97 = arith.cmpf oge, %65, %96 : vector<1x384xf32>
    %cst_27 = arith.constant 1.000000e+00 : f32
    %98 = vector.broadcast %cst_27 : f32 to vector<1x384xf32>
    %99 = arith.select %97, %98, %95 : vector<1x384xi1>, vector<1x384xf32>
    %cst_28 = arith.constant -1.000000e+00 : f32
    %100 = vector.broadcast %cst_28 : f32 to vector<1x384xf32>
    %101 = arith.select %7, %99, %100 : vector<1x384xi1>, vector<1x384xf32>
    %102 = vector.broadcast %72 : vector<1x384xi32> to vector<8x384xi32>
    %103 = arith.cmpi eq, %66, %102 : vector<8x384xi32>
    %104 = arith.extui %103 : vector<8x384xi1> to vector<8x384xi32>
    %105 = arith.sitofp %104 : vector<8x384xi32> to vector<8x384xf32>
    %c0_29 = arith.constant 0 : index
    %c0_30 = arith.constant 0 : index
    %c0_31 = arith.constant 0 : index
    %106 = vector.load %arg2[%c0_29, %c0_30, %c0_31] : memref<4x8x8xf32, #tpu.memory_space<vmem>>, vector<1x8x8xf32>
    %107 = vector.shape_cast %106 : vector<1x8x8xf32> to vector<8x8xf32>
    %cst_32 = arith.constant dense<0.000000e+00> : vector<8x384xf32>
    %108 = tpu.matmul %107, %105, %cst_32 {dimension_numbers = #tpu.dot_dimension_numbers<[1], [0], [0], [1], [0, 0, 1, 1], [], []>} : vector<8x8xf32>, vector<8x384xf32>, vector<8x384xf32> -> vector<8x384xf32>
    %109 = vector.extract_strided_slice %108 {offsets = [0, 0], sizes = [1, 384], strides = [1, 1]} : vector<8x384xf32> to vector<1x384xf32>
    %110 = vector.extract_strided_slice %108 {offsets = [1, 0], sizes = [1, 384], strides = [1, 1]} : vector<8x384xf32> to vector<1x384xf32>
    %111 = vector.extract_strided_slice %108 {offsets = [2, 0], sizes = [1, 384], strides = [1, 1]} : vector<8x384xf32> to vector<1x384xf32>
    %112 = vector.extract_strided_slice %108 {offsets = [3, 0], sizes = [1, 384], strides = [1, 1]} : vector<8x384xf32> to vector<1x384xf32>
    %113 = arith.subf %111, %109 : vector<1x384xf32>
    %cst_33 = arith.constant 1.000000e+00 : f32
    %114 = vector.broadcast %cst_33 : f32 to vector<1x384xf32>
    %115 = arith.addf %113, %114 : vector<1x384xf32>
    %116 = arith.subf %112, %110 : vector<1x384xf32>
    %cst_34 = arith.constant 1.000000e+00 : f32
    %117 = vector.broadcast %cst_34 : f32 to vector<1x384xf32>
    %118 = arith.addf %116, %117 : vector<1x384xf32>
    %cst_35 = arith.constant 5.000000e-01 : f32
    %119 = vector.broadcast %cst_35 : f32 to vector<1x384xf32>
    %120 = arith.mulf %119, %115 : vector<1x384xf32>
    %121 = arith.addf %109, %120 : vector<1x384xf32>
    %cst_36 = arith.constant 5.000000e-01 : f32
    %122 = vector.broadcast %cst_36 : f32 to vector<1x384xf32>
    %123 = arith.mulf %122, %118 : vector<1x384xf32>
    %124 = arith.addf %110, %123 : vector<1x384xf32>
    %125 = arith.subf %121, %9 : vector<1x384xf32>
    %126 = arith.mulf %125, %11 : vector<1x384xf32>
    %127 = arith.subf %124, %10 : vector<1x384xf32>
    %128 = arith.mulf %127, %12 : vector<1x384xf32>
    %129 = arith.mulf %115, %11 : vector<1x384xf32>
    %130 = math.log %129 : vector<1x384xf32>
    %131 = arith.mulf %118, %12 : vector<1x384xf32>
    %132 = math.log %131 : vector<1x384xf32>
    %133 = tpu.concatenate %126, %128, %130, %132 in 0 : vector<1x384xf32>, vector<1x384xf32>, vector<1x384xf32>, vector<1x384xf32> -> vector<4x384xf32>
    %cst_37 = arith.constant 0.000000e+00 : f32
    %134 = vector.shape_cast %7 : vector<1x384xi1> to vector<1x384xi1>
    %135 = vector.broadcast %134 : vector<1x384xi1> to vector<4x384xi1>
    %136 = vector.broadcast %cst_37 : f32 to vector<4x384xf32>
    %137 = arith.select %135, %133, %136 : vector<4x384xi1>, vector<4x384xf32>
    %138 = tpu.concatenate %137, %101, %13 in 0 : vector<4x384xf32>, vector<1x384xf32>, vector<3x384xf32> -> vector<8x384xf32>
    %c0_38 = arith.constant 0 : index
    %c0_39 = arith.constant 0 : index
    %c0_40 = arith.constant 0 : index
    %139 = vector.load %arg3[%c0_38, %c0_39, %c0_40] : memref<4x8x384xf32, #tpu.memory_space<vmem>>, vector<1x8x384xf32>
    %140 = vector.shape_cast %139 : vector<1x8x384xf32> to vector<8x384xf32>
    %141 = vector.shape_cast %138 : vector<8x384xf32> to vector<1x8x384xf32>
    tpu.vector_store %arg3[%c0_38, %c0_39, %c0_40], %141 {strides = array<i32>} : memref<4x8x384xf32, #tpu.memory_space<vmem>>, vector<1x8x384xf32>,
    %c1 = arith.constant 1 : index
    %c0_41 = arith.constant 0 : index
    %c0_42 = arith.constant 0 : index
    %142 = vector.load %arg1[%c1, %c0_41, %c0_42] : memref<4x8x8xf32, #tpu.memory_space<vmem>>, vector<1x8x8xf32>
    %143 = vector.shape_cast %142 : vector<1x8x8xf32> to vector<8x8xf32>
    %144 = vector.extract_strided_slice %143 {offsets = [0, 0], sizes = [8, 1], strides = [1, 1]} : vector<8x8xf32> to vector<8x1xf32>
    %145 = vector.extract_strided_slice %143 {offsets = [0, 1], sizes = [8, 1], strides = [1, 1]} : vector<8x8xf32> to vector<8x1xf32>
    %146 = vector.extract_strided_slice %143 {offsets = [0, 2], sizes = [8, 1], strides = [1, 1]} : vector<8x8xf32> to vector<8x1xf32>
    %147 = vector.extract_strided_slice %143 {offsets = [0, 3], sizes = [8, 1], strides = [1, 1]} : vector<8x8xf32> to vector<8x1xf32>
    %148 = vector.extract_strided_slice %143 {offsets = [0, 4], sizes = [8, 1], strides = [1, 1]} : vector<8x8xf32> to vector<8x1xf32>
    %cst_43 = arith.constant 5.000000e-01 : f32
    %149 = vector.broadcast %cst_43 : f32 to vector<8x1xf32>
    %150 = arith.cmpf ogt, %148, %149 : vector<8x1xf32>
    %151 = vector.broadcast %3 : vector<1x384xf32> to vector<8x384xf32>
    %152 = vector.broadcast %146 : vector<8x1xf32> to vector<8x384xf32>
    %153 = arith.minimumf %151, %152 : vector<8x384xf32>
    %154 = vector.broadcast %1 : vector<1x384xf32> to vector<8x384xf32>
    %155 = vector.broadcast %144 : vector<8x1xf32> to vector<8x384xf32>
    %156 = arith.maximumf %154, %155 : vector<8x384xf32>
    %157 = arith.subf %153, %156 : vector<8x384xf32>
    %cst_44 = arith.constant 1.000000e+00 : f32
    %158 = vector.broadcast %cst_44 : f32 to vector<8x384xf32>
    %159 = arith.addf %157, %158 : vector<8x384xf32>
    %cst_45 = arith.constant 0.000000e+00 : f32
    %160 = vector.broadcast %cst_45 : f32 to vector<8x384xf32>
    %161 = arith.maximumf %159, %160 : vector<8x384xf32>
    %162 = vector.broadcast %4 : vector<1x384xf32> to vector<8x384xf32>
    %163 = vector.broadcast %147 : vector<8x1xf32> to vector<8x384xf32>
    %164 = arith.minimumf %162, %163 : vector<8x384xf32>
    %165 = vector.broadcast %2 : vector<1x384xf32> to vector<8x384xf32>
    %166 = vector.broadcast %145 : vector<8x1xf32> to vector<8x384xf32>
    %167 = arith.maximumf %165, %166 : vector<8x384xf32>
    %168 = arith.subf %164, %167 : vector<8x384xf32>
    %cst_46 = arith.constant 1.000000e+00 : f32
    %169 = vector.broadcast %cst_46 : f32 to vector<8x384xf32>
    %170 = arith.addf %168, %169 : vector<8x384xf32>
    %cst_47 = arith.constant 0.000000e+00 : f32
    %171 = vector.broadcast %cst_47 : f32 to vector<8x384xf32>
    %172 = arith.maximumf %170, %171 : vector<8x384xf32>
    %173 = arith.mulf %161, %172 : vector<8x384xf32>
    %174 = arith.subf %146, %144 : vector<8x1xf32>
    %cst_48 = arith.constant 1.000000e+00 : f32
    %175 = vector.broadcast %cst_48 : f32 to vector<8x1xf32>
    %176 = arith.addf %174, %175 : vector<8x1xf32>
    %177 = arith.subf %147, %145 : vector<8x1xf32>
    %cst_49 = arith.constant 1.000000e+00 : f32
    %178 = vector.broadcast %cst_49 : f32 to vector<8x1xf32>
    %179 = arith.addf %177, %178 : vector<8x1xf32>
    %180 = arith.mulf %176, %179 : vector<8x1xf32>
    %181 = vector.broadcast %8 : vector<1x384xf32> to vector<8x384xf32>
    %182 = vector.broadcast %180 : vector<8x1xf32> to vector<8x384xf32>
    %183 = arith.addf %181, %182 : vector<8x384xf32>
    %184 = arith.subf %183, %173 : vector<8x384xf32>
    %185 = tpu.reciprocal %184 {approx = true} : vector<8x384xf32> -> vector<8x384xf32>
    %186 = arith.mulf %173, %185 : vector<8x384xf32>
    %187 = vector.broadcast %150 : vector<8x1xi1> to vector<8x384xi1>
    %188 = vector.broadcast %7 : vector<1x384xi1> to vector<8x384xi1>
    %189 = arith.andi %187, %188 : vector<8x384xi1>
    %cst_50 = arith.constant -1.000000e+00 : f32
    %190 = vector.broadcast %cst_50 : f32 to vector<8x384xf32>
    %191 = arith.select %189, %186, %190 : vector<8x384xi1>, vector<8x384xf32>
    %cst_51 = arith.constant dense<0xFF800000> : vector<384xf32>
    %192 = vector.multi_reduction <maximumf>, %191, %cst_51 [0] : vector<8x384xf32> to vector<384xf32>
    %193 = vector.shape_cast %192 : vector<384xf32> to vector<1x384xf32>
    %194 = tpu.iota {dimensions = array<i32: 0>} : vector<8x384xi32>
    %195 = vector.broadcast %193 : vector<1x384xf32> to vector<8x384xf32>
    %196 = arith.cmpf oeq, %191, %195 : vector<8x384xf32>
    %c8_i32_52 = arith.constant 8 : i32
    %197 = vector.broadcast %c8_i32_52 : i32 to vector<8x384xi32>
    %198 = arith.select %196, %194, %197 : vector<8x384xi1>, vector<8x384xi32>
    %cst_53 = arith.constant dense<2147483647> : vector<384xi32>
    %199 = vector.multi_reduction <minsi>, %198, %cst_53 [0] : vector<8x384xi32> to vector<384xi32>
    %200 = vector.shape_cast %199 : vector<384xi32> to vector<1x384xi32>
    %cst_54 = arith.constant dense<0xFF800000> : vector<8xf32>
    %201 = vector.multi_reduction <maximumf>, %191, %cst_54 [1] : vector<8x384xf32> to vector<8xf32>
    %202 = vector.shape_cast %201 : vector<8xf32> to vector<8x1xf32>
    %cst_55 = arith.constant 0.000000e+00 : f32
    %203 = vector.broadcast %cst_55 : f32 to vector<8x1xf32>
    %204 = arith.cmpf oeq, %202, %203 : vector<8x1xf32>
    %cst_56 = arith.constant 9.99999974E-6 : f32
    %205 = vector.broadcast %cst_56 : f32 to vector<8x1xf32>
    %206 = arith.select %204, %205, %202 : vector<8x1xi1>, vector<8x1xf32>
    %207 = vector.broadcast %206 : vector<8x1xf32> to vector<8x384xf32>
    %208 = arith.cmpf oeq, %191, %207 : vector<8x384xf32>
    %209 = arith.andi %208, %189 : vector<8x384xi1>
    %cst_57 = arith.constant 1.000000e+00 : f32
    %cst_58 = arith.constant 0.000000e+00 : f32
    %210 = vector.broadcast %cst_57 : f32 to vector<8x384xf32>
    %211 = vector.broadcast %cst_58 : f32 to vector<8x384xf32>
    %212 = arith.select %209, %210, %211 : vector<8x384xi1>, vector<8x384xf32>
    %cst_59 = arith.constant dense<0.000000e+00> : vector<384xf32>
    %213 = vector.multi_reduction <add>, %212, %cst_59 [0] : vector<8x384xf32> to vector<384xf32>
    %214 = vector.shape_cast %213 : vector<384xf32> to vector<1x384xf32>
    %cst_60 = arith.constant -1.000000e+00 : f32
    %215 = vector.broadcast %cst_60 : f32 to vector<1x384xf32>
    %cst_61 = arith.constant 3.000000e-01 : f32
    %216 = vector.broadcast %cst_61 : f32 to vector<1x384xf32>
    %217 = arith.cmpf olt, %193, %216 : vector<1x384xf32>
    %cst_62 = arith.constant 0.000000e+00 : f32
    %218 = vector.broadcast %cst_62 : f32 to vector<1x384xf32>
    %219 = arith.select %217, %218, %215 : vector<1x384xi1>, vector<1x384xf32>
    %cst_63 = arith.constant 0.000000e+00 : f32
    %220 = vector.broadcast %cst_63 : f32 to vector<1x384xf32>
    %221 = arith.cmpf ogt, %214, %220 : vector<1x384xf32>
    %cst_64 = arith.constant 1.000000e+00 : f32
    %222 = vector.broadcast %cst_64 : f32 to vector<1x384xf32>
    %223 = arith.select %221, %222, %219 : vector<1x384xi1>, vector<1x384xf32>
    %cst_65 = arith.constant 0.699999988 : f32
    %224 = vector.broadcast %cst_65 : f32 to vector<1x384xf32>
    %225 = arith.cmpf oge, %193, %224 : vector<1x384xf32>
    %cst_66 = arith.constant 1.000000e+00 : f32
    %226 = vector.broadcast %cst_66 : f32 to vector<1x384xf32>
    %227 = arith.select %225, %226, %223 : vector<1x384xi1>, vector<1x384xf32>
    %cst_67 = arith.constant -1.000000e+00 : f32
    %228 = vector.broadcast %cst_67 : f32 to vector<1x384xf32>
    %229 = arith.select %7, %227, %228 : vector<1x384xi1>, vector<1x384xf32>
    %230 = vector.broadcast %200 : vector<1x384xi32> to vector<8x384xi32>
    %231 = arith.cmpi eq, %194, %230 : vector<8x384xi32>
    %232 = arith.extui %231 : vector<8x384xi1> to vector<8x384xi32>
    %233 = arith.sitofp %232 : vector<8x384xi32> to vector<8x384xf32>
    %c1_68 = arith.constant 1 : index
    %c0_69 = arith.constant 0 : index
    %c0_70 = arith.constant 0 : index
    %234 = vector.load %arg2[%c1_68, %c0_69, %c0_70] : memref<4x8x8xf32, #tpu.memory_space<vmem>>, vector<1x8x8xf32>
    %235 = vector.shape_cast %234 : vector<1x8x8xf32> to vector<8x8xf32>
    %cst_71 = arith.constant dense<0.000000e+00> : vector<8x384xf32>
    %236 = tpu.matmul %235, %233, %cst_71 {dimension_numbers = #tpu.dot_dimension_numbers<[1], [0], [0], [1], [0, 0, 1, 1], [], []>} : vector<8x8xf32>, vector<8x384xf32>, vector<8x384xf32> -> vector<8x384xf32>
    %237 = vector.extract_strided_slice %236 {offsets = [0, 0], sizes = [1, 384], strides = [1, 1]} : vector<8x384xf32> to vector<1x384xf32>
    %238 = vector.extract_strided_slice %236 {offsets = [1, 0], sizes = [1, 384], strides = [1, 1]} : vector<8x384xf32> to vector<1x384xf32>
    %239 = vector.extract_strided_slice %236 {offsets = [2, 0], sizes = [1, 384], strides = [1, 1]} : vector<8x384xf32> to vector<1x384xf32>
    %240 = vector.extract_strided_slice %236 {offsets = [3, 0], sizes = [1, 384], strides = [1, 1]} : vector<8x384xf32> to vector<1x384xf32>
    %241 = arith.subf %239, %237 : vector<1x384xf32>
    %cst_72 = arith.constant 1.000000e+00 : f32
    %242 = vector.broadcast %cst_72 : f32 to vector<1x384xf32>
    %243 = arith.addf %241, %242 : vector<1x384xf32>
    %244 = arith.subf %240, %238 : vector<1x384xf32>
    %cst_73 = arith.constant 1.000000e+00 : f32
    %245 = vector.broadcast %cst_73 : f32 to vector<1x384xf32>
    %246 = arith.addf %244, %245 : vector<1x384xf32>
    %cst_74 = arith.constant 5.000000e-01 : f32
    %247 = vector.broadcast %cst_74 : f32 to vector<1x384xf32>
    %248 = arith.mulf %247, %243 : vector<1x384xf32>
    %249 = arith.addf %237, %248 : vector<1x384xf32>
    %cst_75 = arith.constant 5.000000e-01 : f32
    %250 = vector.broadcast %cst_75 : f32 to vector<1x384xf32>
    %251 = arith.mulf %250, %246 : vector<1x384xf32>
    %252 = arith.addf %238, %251 : vector<1x384xf32>
    %253 = arith.subf %249, %9 : vector<1x384xf32>
    %254 = arith.mulf %253, %11 : vector<1x384xf32>
    %255 = arith.subf %252, %10 : vector<1x384xf32>
    %256 = arith.mulf %255, %12 : vector<1x384xf32>
    %257 = arith.mulf %243, %11 : vector<1x384xf32>
    %258 = math.log %257 : vector<1x384xf32>
    %259 = arith.mulf %246, %12 : vector<1x384xf32>
    %260 = math.log %259 : vector<1x384xf32>
    %261 = tpu.concatenate %254, %256, %258, %260 in 0 : vector<1x384xf32>, vector<1x384xf32>, vector<1x384xf32>, vector<1x384xf32> -> vector<4x384xf32>
    %cst_76 = arith.constant 0.000000e+00 : f32
    %262 = vector.shape_cast %7 : vector<1x384xi1> to vector<1x384xi1>
    %263 = vector.broadcast %262 : vector<1x384xi1> to vector<4x384xi1>
    %264 = vector.broadcast %cst_76 : f32 to vector<4x384xf32>
    %265 = arith.select %263, %261, %264 : vector<4x384xi1>, vector<4x384xf32>
    %266 = tpu.concatenate %265, %229, %13 in 0 : vector<4x384xf32>, vector<1x384xf32>, vector<3x384xf32> -> vector<8x384xf32>
    %c1_77 = arith.constant 1 : index
    %c0_78 = arith.constant 0 : index
    %c0_79 = arith.constant 0 : index
    %267 = vector.load %arg3[%c1_77, %c0_78, %c0_79] : memref<4x8x384xf32, #tpu.memory_space<vmem>>, vector<1x8x384xf32>
    %268 = vector.shape_cast %267 : vector<1x8x384xf32> to vector<8x384xf32>
    %269 = vector.shape_cast %266 : vector<8x384xf32> to vector<1x8x384xf32>
    tpu.vector_store %arg3[%c1_77, %c0_78, %c0_79], %269 {strides = array<i32>} : memref<4x8x384xf32, #tpu.memory_space<vmem>>, vector<1x8x384xf32>,
    %c2 = arith.constant 2 : index
    %c0_80 = arith.constant 0 : index
    %c0_81 = arith.constant 0 : index
    %270 = vector.load %arg1[%c2, %c0_80, %c0_81] : memref<4x8x8xf32, #tpu.memory_space<vmem>>, vector<1x8x8xf32>
    %271 = vector.shape_cast %270 : vector<1x8x8xf32> to vector<8x8xf32>
    %272 = vector.extract_strided_slice %271 {offsets = [0, 0], sizes = [8, 1], strides = [1, 1]} : vector<8x8xf32> to vector<8x1xf32>
    %273 = vector.extract_strided_slice %271 {offsets = [0, 1], sizes = [8, 1], strides = [1, 1]} : vector<8x8xf32> to vector<8x1xf32>
    %274 = vector.extract_strided_slice %271 {offsets = [0, 2], sizes = [8, 1], strides = [1, 1]} : vector<8x8xf32> to vector<8x1xf32>
    %275 = vector.extract_strided_slice %271 {offsets = [0, 3], sizes = [8, 1], strides = [1, 1]} : vector<8x8xf32> to vector<8x1xf32>
    %276 = vector.extract_strided_slice %271 {offsets = [0, 4], sizes = [8, 1], strides = [1, 1]} : vector<8x8xf32> to vector<8x1xf32>
    %cst_82 = arith.constant 5.000000e-01 : f32
    %277 = vector.broadcast %cst_82 : f32 to vector<8x1xf32>
    %278 = arith.cmpf ogt, %276, %277 : vector<8x1xf32>
    %279 = vector.broadcast %3 : vector<1x384xf32> to vector<8x384xf32>
    %280 = vector.broadcast %274 : vector<8x1xf32> to vector<8x384xf32>
    %281 = arith.minimumf %279, %280 : vector<8x384xf32>
    %282 = vector.broadcast %1 : vector<1x384xf32> to vector<8x384xf32>
    %283 = vector.broadcast %272 : vector<8x1xf32> to vector<8x384xf32>
    %284 = arith.maximumf %282, %283 : vector<8x384xf32>
    %285 = arith.subf %281, %284 : vector<8x384xf32>
    %cst_83 = arith.constant 1.000000e+00 : f32
    %286 = vector.broadcast %cst_83 : f32 to vector<8x384xf32>
    %287 = arith.addf %285, %286 : vector<8x384xf32>
    %cst_84 = arith.constant 0.000000e+00 : f32
    %288 = vector.broadcast %cst_84 : f32 to vector<8x384xf32>
    %289 = arith.maximumf %287, %288 : vector<8x384xf32>
    %290 = vector.broadcast %4 : vector<1x384xf32> to vector<8x384xf32>
    %291 = vector.broadcast %275 : vector<8x1xf32> to vector<8x384xf32>
    %292 = arith.minimumf %290, %291 : vector<8x384xf32>
    %293 = vector.broadcast %2 : vector<1x384xf32> to vector<8x384xf32>
    %294 = vector.broadcast %273 : vector<8x1xf32> to vector<8x384xf32>
    %295 = arith.maximumf %293, %294 : vector<8x384xf32>
    %296 = arith.subf %292, %295 : vector<8x384xf32>
    %cst_85 = arith.constant 1.000000e+00 : f32
    %297 = vector.broadcast %cst_85 : f32 to vector<8x384xf32>
    %298 = arith.addf %296, %297 : vector<8x384xf32>
    %cst_86 = arith.constant 0.000000e+00 : f32
    %299 = vector.broadcast %cst_86 : f32 to vector<8x384xf32>
    %300 = arith.maximumf %298, %299 : vector<8x384xf32>
    %301 = arith.mulf %289, %300 : vector<8x384xf32>
    %302 = arith.subf %274, %272 : vector<8x1xf32>
    %cst_87 = arith.constant 1.000000e+00 : f32
    %303 = vector.broadcast %cst_87 : f32 to vector<8x1xf32>
    %304 = arith.addf %302, %303 : vector<8x1xf32>
    %305 = arith.subf %275, %273 : vector<8x1xf32>
    %cst_88 = arith.constant 1.000000e+00 : f32
    %306 = vector.broadcast %cst_88 : f32 to vector<8x1xf32>
    %307 = arith.addf %305, %306 : vector<8x1xf32>
    %308 = arith.mulf %304, %307 : vector<8x1xf32>
    %309 = vector.broadcast %8 : vector<1x384xf32> to vector<8x384xf32>
    %310 = vector.broadcast %308 : vector<8x1xf32> to vector<8x384xf32>
    %311 = arith.addf %309, %310 : vector<8x384xf32>
    %312 = arith.subf %311, %301 : vector<8x384xf32>
    %313 = tpu.reciprocal %312 {approx = true} : vector<8x384xf32> -> vector<8x384xf32>
    %314 = arith.mulf %301, %313 : vector<8x384xf32>
    %315 = vector.broadcast %278 : vector<8x1xi1> to vector<8x384xi1>
    %316 = vector.broadcast %7 : vector<1x384xi1> to vector<8x384xi1>
    %317 = arith.andi %315, %316 : vector<8x384xi1>
    %cst_89 = arith.constant -1.000000e+00 : f32
    %318 = vector.broadcast %cst_89 : f32 to vector<8x384xf32>
    %319 = arith.select %317, %314, %318 : vector<8x384xi1>, vector<8x384xf32>
    %cst_90 = arith.constant dense<0xFF800000> : vector<384xf32>
    %320 = vector.multi_reduction <maximumf>, %319, %cst_90 [0] : vector<8x384xf32> to vector<384xf32>
    %321 = vector.shape_cast %320 : vector<384xf32> to vector<1x384xf32>
    %322 = tpu.iota {dimensions = array<i32: 0>} : vector<8x384xi32>
    %323 = vector.broadcast %321 : vector<1x384xf32> to vector<8x384xf32>
    %324 = arith.cmpf oeq, %319, %323 : vector<8x384xf32>
    %c8_i32_91 = arith.constant 8 : i32
    %325 = vector.broadcast %c8_i32_91 : i32 to vector<8x384xi32>
    %326 = arith.select %324, %322, %325 : vector<8x384xi1>, vector<8x384xi32>
    %cst_92 = arith.constant dense<2147483647> : vector<384xi32>
    %327 = vector.multi_reduction <minsi>, %326, %cst_92 [0] : vector<8x384xi32> to vector<384xi32>
    %328 = vector.shape_cast %327 : vector<384xi32> to vector<1x384xi32>
    %cst_93 = arith.constant dense<0xFF800000> : vector<8xf32>
    %329 = vector.multi_reduction <maximumf>, %319, %cst_93 [1] : vector<8x384xf32> to vector<8xf32>
    %330 = vector.shape_cast %329 : vector<8xf32> to vector<8x1xf32>
    %cst_94 = arith.constant 0.000000e+00 : f32
    %331 = vector.broadcast %cst_94 : f32 to vector<8x1xf32>
    %332 = arith.cmpf oeq, %330, %331 : vector<8x1xf32>
    %cst_95 = arith.constant 9.99999974E-6 : f32
    %333 = vector.broadcast %cst_95 : f32 to vector<8x1xf32>
    %334 = arith.select %332, %333, %330 : vector<8x1xi1>, vector<8x1xf32>
    %335 = vector.broadcast %334 : vector<8x1xf32> to vector<8x384xf32>
    %336 = arith.cmpf oeq, %319, %335 : vector<8x384xf32>
    %337 = arith.andi %336, %317 : vector<8x384xi1>
    %cst_96 = arith.constant 1.000000e+00 : f32
    %cst_97 = arith.constant 0.000000e+00 : f32
    %338 = vector.broadcast %cst_96 : f32 to vector<8x384xf32>
    %339 = vector.broadcast %cst_97 : f32 to vector<8x384xf32>
    %340 = arith.select %337, %338, %339 : vector<8x384xi1>, vector<8x384xf32>
    %cst_98 = arith.constant dense<0.000000e+00> : vector<384xf32>
    %341 = vector.multi_reduction <add>, %340, %cst_98 [0] : vector<8x384xf32> to vector<384xf32>
    %342 = vector.shape_cast %341 : vector<384xf32> to vector<1x384xf32>
    %cst_99 = arith.constant -1.000000e+00 : f32
    %343 = vector.broadcast %cst_99 : f32 to vector<1x384xf32>
    %cst_100 = arith.constant 3.000000e-01 : f32
    %344 = vector.broadcast %cst_100 : f32 to vector<1x384xf32>
    %345 = arith.cmpf olt, %321, %344 : vector<1x384xf32>
    %cst_101 = arith.constant 0.000000e+00 : f32
    %346 = vector.broadcast %cst_101 : f32 to vector<1x384xf32>
    %347 = arith.select %345, %346, %343 : vector<1x384xi1>, vector<1x384xf32>
    %cst_102 = arith.constant 0.000000e+00 : f32
    %348 = vector.broadcast %cst_102 : f32 to vector<1x384xf32>
    %349 = arith.cmpf ogt, %342, %348 : vector<1x384xf32>
    %cst_103 = arith.constant 1.000000e+00 : f32
    %350 = vector.broadcast %cst_103 : f32 to vector<1x384xf32>
    %351 = arith.select %349, %350, %347 : vector<1x384xi1>, vector<1x384xf32>
    %cst_104 = arith.constant 0.699999988 : f32
    %352 = vector.broadcast %cst_104 : f32 to vector<1x384xf32>
    %353 = arith.cmpf oge, %321, %352 : vector<1x384xf32>
    %cst_105 = arith.constant 1.000000e+00 : f32
    %354 = vector.broadcast %cst_105 : f32 to vector<1x384xf32>
    %355 = arith.select %353, %354, %351 : vector<1x384xi1>, vector<1x384xf32>
    %cst_106 = arith.constant -1.000000e+00 : f32
    %356 = vector.broadcast %cst_106 : f32 to vector<1x384xf32>
    %357 = arith.select %7, %355, %356 : vector<1x384xi1>, vector<1x384xf32>
    %358 = vector.broadcast %328 : vector<1x384xi32> to vector<8x384xi32>
    %359 = arith.cmpi eq, %322, %358 : vector<8x384xi32>
    %360 = arith.extui %359 : vector<8x384xi1> to vector<8x384xi32>
    %361 = arith.sitofp %360 : vector<8x384xi32> to vector<8x384xf32>
    %c2_107 = arith.constant 2 : index
    %c0_108 = arith.constant 0 : index
    %c0_109 = arith.constant 0 : index
    %362 = vector.load %arg2[%c2_107, %c0_108, %c0_109] : memref<4x8x8xf32, #tpu.memory_space<vmem>>, vector<1x8x8xf32>
    %363 = vector.shape_cast %362 : vector<1x8x8xf32> to vector<8x8xf32>
    %cst_110 = arith.constant dense<0.000000e+00> : vector<8x384xf32>
    %364 = tpu.matmul %363, %361, %cst_110 {dimension_numbers = #tpu.dot_dimension_numbers<[1], [0], [0], [1], [0, 0, 1, 1], [], []>} : vector<8x8xf32>, vector<8x384xf32>, vector<8x384xf32> -> vector<8x384xf32>
    %365 = vector.extract_strided_slice %364 {offsets = [0, 0], sizes = [1, 384], strides = [1, 1]} : vector<8x384xf32> to vector<1x384xf32>
    %366 = vector.extract_strided_slice %364 {offsets = [1, 0], sizes = [1, 384], strides = [1, 1]} : vector<8x384xf32> to vector<1x384xf32>
    %367 = vector.extract_strided_slice %364 {offsets = [2, 0], sizes = [1, 384], strides = [1, 1]} : vector<8x384xf32> to vector<1x384xf32>
    %368 = vector.extract_strided_slice %364 {offsets = [3, 0], sizes = [1, 384], strides = [1, 1]} : vector<8x384xf32> to vector<1x384xf32>
    %369 = arith.subf %367, %365 : vector<1x384xf32>
    %cst_111 = arith.constant 1.000000e+00 : f32
    %370 = vector.broadcast %cst_111 : f32 to vector<1x384xf32>
    %371 = arith.addf %369, %370 : vector<1x384xf32>
    %372 = arith.subf %368, %366 : vector<1x384xf32>
    %cst_112 = arith.constant 1.000000e+00 : f32
    %373 = vector.broadcast %cst_112 : f32 to vector<1x384xf32>
    %374 = arith.addf %372, %373 : vector<1x384xf32>
    %cst_113 = arith.constant 5.000000e-01 : f32
    %375 = vector.broadcast %cst_113 : f32 to vector<1x384xf32>
    %376 = arith.mulf %375, %371 : vector<1x384xf32>
    %377 = arith.addf %365, %376 : vector<1x384xf32>
    %cst_114 = arith.constant 5.000000e-01 : f32
    %378 = vector.broadcast %cst_114 : f32 to vector<1x384xf32>
    %379 = arith.mulf %378, %374 : vector<1x384xf32>
    %380 = arith.addf %366, %379 : vector<1x384xf32>
    %381 = arith.subf %377, %9 : vector<1x384xf32>
    %382 = arith.mulf %381, %11 : vector<1x384xf32>
    %383 = arith.subf %380, %10 : vector<1x384xf32>
    %384 = arith.mulf %383, %12 : vector<1x384xf32>
    %385 = arith.mulf %371, %11 : vector<1x384xf32>
    %386 = math.log %385 : vector<1x384xf32>
    %387 = arith.mulf %374, %12 : vector<1x384xf32>
    %388 = math.log %387 : vector<1x384xf32>
    %389 = tpu.concatenate %382, %384, %386, %388 in 0 : vector<1x384xf32>, vector<1x384xf32>, vector<1x384xf32>, vector<1x384xf32> -> vector<4x384xf32>
    %cst_115 = arith.constant 0.000000e+00 : f32
    %390 = vector.shape_cast %7 : vector<1x384xi1> to vector<1x384xi1>
    %391 = vector.broadcast %390 : vector<1x384xi1> to vector<4x384xi1>
    %392 = vector.broadcast %cst_115 : f32 to vector<4x384xf32>
    %393 = arith.select %391, %389, %392 : vector<4x384xi1>, vector<4x384xf32>
    %394 = tpu.concatenate %393, %357, %13 in 0 : vector<4x384xf32>, vector<1x384xf32>, vector<3x384xf32> -> vector<8x384xf32>
    %c2_116 = arith.constant 2 : index
    %c0_117 = arith.constant 0 : index
    %c0_118 = arith.constant 0 : index
    %395 = vector.load %arg3[%c2_116, %c0_117, %c0_118] : memref<4x8x384xf32, #tpu.memory_space<vmem>>, vector<1x8x384xf32>
    %396 = vector.shape_cast %395 : vector<1x8x384xf32> to vector<8x384xf32>
    %397 = vector.shape_cast %394 : vector<8x384xf32> to vector<1x8x384xf32>
    tpu.vector_store %arg3[%c2_116, %c0_117, %c0_118], %397 {strides = array<i32>} : memref<4x8x384xf32, #tpu.memory_space<vmem>>, vector<1x8x384xf32>,
    %c3 = arith.constant 3 : index
    %c0_119 = arith.constant 0 : index
    %c0_120 = arith.constant 0 : index
    %398 = vector.load %arg1[%c3, %c0_119, %c0_120] : memref<4x8x8xf32, #tpu.memory_space<vmem>>, vector<1x8x8xf32>
    %399 = vector.shape_cast %398 : vector<1x8x8xf32> to vector<8x8xf32>
    %400 = vector.extract_strided_slice %399 {offsets = [0, 0], sizes = [8, 1], strides = [1, 1]} : vector<8x8xf32> to vector<8x1xf32>
    %401 = vector.extract_strided_slice %399 {offsets = [0, 1], sizes = [8, 1], strides = [1, 1]} : vector<8x8xf32> to vector<8x1xf32>
    %402 = vector.extract_strided_slice %399 {offsets = [0, 2], sizes = [8, 1], strides = [1, 1]} : vector<8x8xf32> to vector<8x1xf32>
    %403 = vector.extract_strided_slice %399 {offsets = [0, 3], sizes = [8, 1], strides = [1, 1]} : vector<8x8xf32> to vector<8x1xf32>
    %404 = vector.extract_strided_slice %399 {offsets = [0, 4], sizes = [8, 1], strides = [1, 1]} : vector<8x8xf32> to vector<8x1xf32>
    %cst_121 = arith.constant 5.000000e-01 : f32
    %405 = vector.broadcast %cst_121 : f32 to vector<8x1xf32>
    %406 = arith.cmpf ogt, %404, %405 : vector<8x1xf32>
    %407 = vector.broadcast %3 : vector<1x384xf32> to vector<8x384xf32>
    %408 = vector.broadcast %402 : vector<8x1xf32> to vector<8x384xf32>
    %409 = arith.minimumf %407, %408 : vector<8x384xf32>
    %410 = vector.broadcast %1 : vector<1x384xf32> to vector<8x384xf32>
    %411 = vector.broadcast %400 : vector<8x1xf32> to vector<8x384xf32>
    %412 = arith.maximumf %410, %411 : vector<8x384xf32>
    %413 = arith.subf %409, %412 : vector<8x384xf32>
    %cst_122 = arith.constant 1.000000e+00 : f32
    %414 = vector.broadcast %cst_122 : f32 to vector<8x384xf32>
    %415 = arith.addf %413, %414 : vector<8x384xf32>
    %cst_123 = arith.constant 0.000000e+00 : f32
    %416 = vector.broadcast %cst_123 : f32 to vector<8x384xf32>
    %417 = arith.maximumf %415, %416 : vector<8x384xf32>
    %418 = vector.broadcast %4 : vector<1x384xf32> to vector<8x384xf32>
    %419 = vector.broadcast %403 : vector<8x1xf32> to vector<8x384xf32>
    %420 = arith.minimumf %418, %419 : vector<8x384xf32>
    %421 = vector.broadcast %2 : vector<1x384xf32> to vector<8x384xf32>
    %422 = vector.broadcast %401 : vector<8x1xf32> to vector<8x384xf32>
    %423 = arith.maximumf %421, %422 : vector<8x384xf32>
    %424 = arith.subf %420, %423 : vector<8x384xf32>
    %cst_124 = arith.constant 1.000000e+00 : f32
    %425 = vector.broadcast %cst_124 : f32 to vector<8x384xf32>
    %426 = arith.addf %424, %425 : vector<8x384xf32>
    %cst_125 = arith.constant 0.000000e+00 : f32
    %427 = vector.broadcast %cst_125 : f32 to vector<8x384xf32>
    %428 = arith.maximumf %426, %427 : vector<8x384xf32>
    %429 = arith.mulf %417, %428 : vector<8x384xf32>
    %430 = arith.subf %402, %400 : vector<8x1xf32>
    %cst_126 = arith.constant 1.000000e+00 : f32
    %431 = vector.broadcast %cst_126 : f32 to vector<8x1xf32>
    %432 = arith.addf %430, %431 : vector<8x1xf32>
    %433 = arith.subf %403, %401 : vector<8x1xf32>
    %cst_127 = arith.constant 1.000000e+00 : f32
    %434 = vector.broadcast %cst_127 : f32 to vector<8x1xf32>
    %435 = arith.addf %433, %434 : vector<8x1xf32>
    %436 = arith.mulf %432, %435 : vector<8x1xf32>
    %437 = vector.broadcast %8 : vector<1x384xf32> to vector<8x384xf32>
    %438 = vector.broadcast %436 : vector<8x1xf32> to vector<8x384xf32>
    %439 = arith.addf %437, %438 : vector<8x384xf32>
    %440 = arith.subf %439, %429 : vector<8x384xf32>
    %441 = tpu.reciprocal %440 {approx = true} : vector<8x384xf32> -> vector<8x384xf32>
    %442 = arith.mulf %429, %441 : vector<8x384xf32>
    %443 = vector.broadcast %406 : vector<8x1xi1> to vector<8x384xi1>
    %444 = vector.broadcast %7 : vector<1x384xi1> to vector<8x384xi1>
    %445 = arith.andi %443, %444 : vector<8x384xi1>
    %cst_128 = arith.constant -1.000000e+00 : f32
    %446 = vector.broadcast %cst_128 : f32 to vector<8x384xf32>
    %447 = arith.select %445, %442, %446 : vector<8x384xi1>, vector<8x384xf32>
    %cst_129 = arith.constant dense<0xFF800000> : vector<384xf32>
    %448 = vector.multi_reduction <maximumf>, %447, %cst_129 [0] : vector<8x384xf32> to vector<384xf32>
    %449 = vector.shape_cast %448 : vector<384xf32> to vector<1x384xf32>
    %450 = tpu.iota {dimensions = array<i32: 0>} : vector<8x384xi32>
    %451 = vector.broadcast %449 : vector<1x384xf32> to vector<8x384xf32>
    %452 = arith.cmpf oeq, %447, %451 : vector<8x384xf32>
    %c8_i32_130 = arith.constant 8 : i32
    %453 = vector.broadcast %c8_i32_130 : i32 to vector<8x384xi32>
    %454 = arith.select %452, %450, %453 : vector<8x384xi1>, vector<8x384xi32>
    %cst_131 = arith.constant dense<2147483647> : vector<384xi32>
    %455 = vector.multi_reduction <minsi>, %454, %cst_131 [0] : vector<8x384xi32> to vector<384xi32>
    %456 = vector.shape_cast %455 : vector<384xi32> to vector<1x384xi32>
    %cst_132 = arith.constant dense<0xFF800000> : vector<8xf32>
    %457 = vector.multi_reduction <maximumf>, %447, %cst_132 [1] : vector<8x384xf32> to vector<8xf32>
    %458 = vector.shape_cast %457 : vector<8xf32> to vector<8x1xf32>
    %cst_133 = arith.constant 0.000000e+00 : f32
    %459 = vector.broadcast %cst_133 : f32 to vector<8x1xf32>
    %460 = arith.cmpf oeq, %458, %459 : vector<8x1xf32>
    %cst_134 = arith.constant 9.99999974E-6 : f32
    %461 = vector.broadcast %cst_134 : f32 to vector<8x1xf32>
    %462 = arith.select %460, %461, %458 : vector<8x1xi1>, vector<8x1xf32>
    %463 = vector.broadcast %462 : vector<8x1xf32> to vector<8x384xf32>
    %464 = arith.cmpf oeq, %447, %463 : vector<8x384xf32>
    %465 = arith.andi %464, %445 : vector<8x384xi1>
    %cst_135 = arith.constant 1.000000e+00 : f32
    %cst_136 = arith.constant 0.000000e+00 : f32
    %466 = vector.broadcast %cst_135 : f32 to vector<8x384xf32>
    %467 = vector.broadcast %cst_136 : f32 to vector<8x384xf32>
    %468 = arith.select %465, %466, %467 : vector<8x384xi1>, vector<8x384xf32>
    %cst_137 = arith.constant dense<0.000000e+00> : vector<384xf32>
    %469 = vector.multi_reduction <add>, %468, %cst_137 [0] : vector<8x384xf32> to vector<384xf32>
    %470 = vector.shape_cast %469 : vector<384xf32> to vector<1x384xf32>
    %cst_138 = arith.constant -1.000000e+00 : f32
    %471 = vector.broadcast %cst_138 : f32 to vector<1x384xf32>
    %cst_139 = arith.constant 3.000000e-01 : f32
    %472 = vector.broadcast %cst_139 : f32 to vector<1x384xf32>
    %473 = arith.cmpf olt, %449, %472 : vector<1x384xf32>
    %cst_140 = arith.constant 0.000000e+00 : f32
    %474 = vector.broadcast %cst_140 : f32 to vector<1x384xf32>
    %475 = arith.select %473, %474, %471 : vector<1x384xi1>, vector<1x384xf32>
    %cst_141 = arith.constant 0.000000e+00 : f32
    %476 = vector.broadcast %cst_141 : f32 to vector<1x384xf32>
    %477 = arith.cmpf ogt, %470, %476 : vector<1x384xf32>
    %cst_142 = arith.constant 1.000000e+00 : f32
    %478 = vector.broadcast %cst_142 : f32 to vector<1x384xf32>
    %479 = arith.select %477, %478, %475 : vector<1x384xi1>, vector<1x384xf32>
    %cst_143 = arith.constant 0.699999988 : f32
    %480 = vector.broadcast %cst_143 : f32 to vector<1x384xf32>
    %481 = arith.cmpf oge, %449, %480 : vector<1x384xf32>
    %cst_144 = arith.constant 1.000000e+00 : f32
    %482 = vector.broadcast %cst_144 : f32 to vector<1x384xf32>
    %483 = arith.select %481, %482, %479 : vector<1x384xi1>, vector<1x384xf32>
    %cst_145 = arith.constant -1.000000e+00 : f32
    %484 = vector.broadcast %cst_145 : f32 to vector<1x384xf32>
    %485 = arith.select %7, %483, %484 : vector<1x384xi1>, vector<1x384xf32>
    %486 = vector.broadcast %456 : vector<1x384xi32> to vector<8x384xi32>
    %487 = arith.cmpi eq, %450, %486 : vector<8x384xi32>
    %488 = arith.extui %487 : vector<8x384xi1> to vector<8x384xi32>
    %489 = arith.sitofp %488 : vector<8x384xi32> to vector<8x384xf32>
    %c3_146 = arith.constant 3 : index
    %c0_147 = arith.constant 0 : index
    %c0_148 = arith.constant 0 : index
    %490 = vector.load %arg2[%c3_146, %c0_147, %c0_148] : memref<4x8x8xf32, #tpu.memory_space<vmem>>, vector<1x8x8xf32>
    %491 = vector.shape_cast %490 : vector<1x8x8xf32> to vector<8x8xf32>
    %cst_149 = arith.constant dense<0.000000e+00> : vector<8x384xf32>
    %492 = tpu.matmul %491, %489, %cst_149 {dimension_numbers = #tpu.dot_dimension_numbers<[1], [0], [0], [1], [0, 0, 1, 1], [], []>} : vector<8x8xf32>, vector<8x384xf32>, vector<8x384xf32> -> vector<8x384xf32>
    %493 = vector.extract_strided_slice %492 {offsets = [0, 0], sizes = [1, 384], strides = [1, 1]} : vector<8x384xf32> to vector<1x384xf32>
    %494 = vector.extract_strided_slice %492 {offsets = [1, 0], sizes = [1, 384], strides = [1, 1]} : vector<8x384xf32> to vector<1x384xf32>
    %495 = vector.extract_strided_slice %492 {offsets = [2, 0], sizes = [1, 384], strides = [1, 1]} : vector<8x384xf32> to vector<1x384xf32>
    %496 = vector.extract_strided_slice %492 {offsets = [3, 0], sizes = [1, 384], strides = [1, 1]} : vector<8x384xf32> to vector<1x384xf32>
    %497 = arith.subf %495, %493 : vector<1x384xf32>
    %cst_150 = arith.constant 1.000000e+00 : f32
    %498 = vector.broadcast %cst_150 : f32 to vector<1x384xf32>
    %499 = arith.addf %497, %498 : vector<1x384xf32>
    %500 = arith.subf %496, %494 : vector<1x384xf32>
    %cst_151 = arith.constant 1.000000e+00 : f32
    %501 = vector.broadcast %cst_151 : f32 to vector<1x384xf32>
    %502 = arith.addf %500, %501 : vector<1x384xf32>
    %cst_152 = arith.constant 5.000000e-01 : f32
    %503 = vector.broadcast %cst_152 : f32 to vector<1x384xf32>
    %504 = arith.mulf %503, %499 : vector<1x384xf32>
    %505 = arith.addf %493, %504 : vector<1x384xf32>
    %cst_153 = arith.constant 5.000000e-01 : f32
    %506 = vector.broadcast %cst_153 : f32 to vector<1x384xf32>
    %507 = arith.mulf %506, %502 : vector<1x384xf32>
    %508 = arith.addf %494, %507 : vector<1x384xf32>
    %509 = arith.subf %505, %9 : vector<1x384xf32>
    %510 = arith.mulf %509, %11 : vector<1x384xf32>
    %511 = arith.subf %508, %10 : vector<1x384xf32>
    %512 = arith.mulf %511, %12 : vector<1x384xf32>
    %513 = arith.mulf %499, %11 : vector<1x384xf32>
    %514 = math.log %513 : vector<1x384xf32>
    %515 = arith.mulf %502, %12 : vector<1x384xf32>
    %516 = math.log %515 : vector<1x384xf32>
    %517 = tpu.concatenate %510, %512, %514, %516 in 0 : vector<1x384xf32>, vector<1x384xf32>, vector<1x384xf32>, vector<1x384xf32> -> vector<4x384xf32>
    %cst_154 = arith.constant 0.000000e+00 : f32
    %518 = vector.shape_cast %7 : vector<1x384xi1> to vector<1x384xi1>
    %519 = vector.broadcast %518 : vector<1x384xi1> to vector<4x384xi1>
    %520 = vector.broadcast %cst_154 : f32 to vector<4x384xf32>
    %521 = arith.select %519, %517, %520 : vector<4x384xi1>, vector<4x384xf32>
    %522 = tpu.concatenate %521, %485, %13 in 0 : vector<4x384xf32>, vector<1x384xf32>, vector<3x384xf32> -> vector<8x384xf32>
    %c3_155 = arith.constant 3 : index
    %c0_156 = arith.constant 0 : index
    %c0_157 = arith.constant 0 : index
    %523 = vector.load %arg3[%c3_155, %c0_156, %c0_157] : memref<4x8x384xf32, #tpu.memory_space<vmem>>, vector<1x8x384xf32>
    %524 = vector.shape_cast %523 : vector<1x8x384xf32> to vector<8x384xf32>
    %525 = vector.shape_cast %522 : vector<8x384xf32> to vector<1x8x384xf32>
    tpu.vector_store %arg3[%c3_155, %c0_156, %c0_157], %525 {strides = array<i32>} : memref<4x8x384xf32, #tpu.memory_space<vmem>>, vector<1x8x384xf32>,
    return
  }
}

</mosaic_0001>

<bundles_post_ra>
// kernel: anchor_target_forward.1
= control target key start
LH: loop header
LB: loop body
LE: loop exit
PB: predicated region body
PF: predicated region fallthrough
CT: control target
= control target key end

     0   :  { %s1943_s16 = smov 2   ;;  %v1944_v4 = vmov 3   ;;  %v1945_v5 = vmov 0   ;;  %v1947_v18 = vmov 2   ;;  %v1948_v19 = vmov 1   ;;  %s3116_s1 = inlined_call_operand.vmem [shape: f32[4,8,8], index: 1, kind: input, shape index: {}]   ;;  %s3117_s0 = inlined_call_operand.vmem [shape: f32[16,384], index: 0, kind: input, shape index: {}]   ;;  %s3118_s2 = inlined_call_operand.vmem [shape: f32[4,8,8], index: 2, kind: input, shape index: {}]   ;;  %s3119_s3 = inlined_call_operand.vmem [shape: f32[4,8,384], index: 3, kind: output, shape index: {}]  }
   0x1   :  { %v1977_v0 = vld [vmem:[%s3116_s1] sm:$0xff]  ;;  %v1982_v1 = vld [vmem:[%s3116_s1 + $0x10] sm:$0xff]  ;;  %v1989_v2 = vld [vmem:[%s3116_s1 + $0x8] sm:$0xff]  ;;  %1877 = vset.pattern.permute.xlu0 %v1944_v4  ;;  %1873 = vset.pattern.permute.xlu1 %v1945_v5  ;;  %v1949_v27 = vmov 4   ;;  %v3120_v33 = vmov 0.0   ;;  %vm3125_vm4 = vmmov 0   ;;  %v25_v36 = vlaneseq }
   0x2   :  { %123 = vrot.lane.b32.xlu0 %v1977_v0, %s1943_s16  ;;  %1006 = vrot.lane.b32.xlu1 %v1982_v1, %s1943_s16  ;;  %v1994_v3 = vld [vmem:[%s3116_s1 + $0x18] sm:$0xff]  ;;  %s1946_s1 = smov 127   ;;  %vm540_vm0 = vcmp.gt.f32.partialorder %v1989_v2, 0.5  ;;  %vm24_vm1 = vcmp.gt.f32.partialorder %v1977_v0, 0.5  ;;  %vm955_vm2 = vcmp.gt.f32.partialorder %v1982_v1, 0.5  ;;  %v2047_v43 = vld [vmem:[%s3117_s0] sm:$0xff] }
   0x3   :  { %v618_v26 = vsel %vm540_vm0, 1, %v1945_v5  ;;  %v162_v30 = vsel %vm24_vm1, 1, %v1945_v5  ;;  %v1033_v31 = vsel %vm955_vm2, 1, %v1945_v5  ;;  %vm1370_vm3 = vcmp.gt.f32.partialorder %v1994_v3, 0.5  ;;  %1842 = vmatprep.subr.mxu1 %v3120_v33  ;;  %376 = vmatprep.mubr.f32.mxu0 %v3120_v33  ;;  %3161 = vst [vmem:[#allocation2_spill] sm:$0xff] %v2047_v43  ;;  %v2052_v44 = vld [vmem:[%s3117_s0 + $0x8] sm:$0xff] }
   0x4   :  { %v1448_v32 = vsel %vm1370_vm3, 1, %v1945_v5  ;;  %1844 = vmatprep.mubr.msk.f32.mxu1 %vm3125_vm4, %v3120_v33  ;;  %v2038_v38 = vshrl.u32 %v25_v36, 7  ;;  %3162 = vst [vmem:[#allocation3_spill] sm:$0xff] %v2052_v44  ;;  %v2057_v45 = vld [vmem:[%s3117_s0 + $0x10] sm:$0xff]  ;;  %vm3124_vm5 = vcmp.gt.f32.partialorder %v2047_v43, 0.5  ;;  %vm3123_vm6 = vcmp.gt.f32.partialorder %v2052_v44, 0.5 }
   0x5   :  { %3163 = vst [vmem:[#allocation4_spill] sm:$0xff] %v2057_v45  ;;  %vm3122_vm7 = vcmp.gt.f32.partialorder %v2057_v45, 0.5 }
   0x6   :  { %591 = vrot.lane.b32.xlu0 %v1989_v2, %s1943_s16  ;;  %1421 = vrot.lane.b32.xlu1 %v1994_v3, %s1943_s16  ;;  %v27_v41 = vsub.s32 2, %v2038_v38  ;;  %v47_v42 = vsub.s32 0, %v2038_v38  ;;  %v75_v47 = vsub.s32 3, %v2038_v38  ;;  %v94_v51 = vsub.s32 1, %v2038_v38 }
   0x7   :  { %v135_v56 = vsub.s32 5, %v2038_v38 }
   0x8   :  { %v2063_v48 = vrot.slane %v2047_v43, %v27_v41  ;;  %v2066_v49 = vrot.slane %v2047_v43, %v47_v42  ;;  %v2072_v52 = vrot.slane %v2052_v44, %v27_v41  ;;  %v2075_v53 = vrot.slane %v2057_v45, %v27_v41 }
   0x9   :  { %v2078_v54 = vrot.slane %v2052_v44, %v47_v42  ;;  %v2081_v55 = vrot.slane %v2057_v45, %v47_v42  ;;  %v2085_v57 = vrot.slane %v2047_v43, %v75_v47  ;;  %v2090_v60 = vrot.slane %v2047_v43, %v94_v51 }
  0x74   :  { %v124_v6 = vpop.permute.xlu0 %123  ;;  %v1007_v7 = vpop.permute.xlu1 %1006 }
  0x75   :  { %v126_v8 = vsub.f32 %v1977_v0, %v124_v6  ;;  %v1009_v9 = vsub.f32 %v1982_v1, %v1007_v7  ;;  %v2103_v6 = vrot.slane %v2052_v44, %v94_v51  ;;  %v2106_v7 = vrot.slane %v2057_v45, %v94_v51 }
  0x77   :  { %v127_v10 = vadd.f32 1.0, %v126_v8  ;;  %v1010_v13 = vadd.f32 1.0, %v1009_v9  ;;  %v2109_v8 = vrot.slane %v2047_v43, %v135_v56  ;;  %v2112_v9 = vrot.slane %v2052_v44, %v135_v56 }
  0x78   :  { %v592_v11 = vpop.permute.xlu0 %591  ;;  %v1422_v12 = vpop.permute.xlu1 %1421 }
  0x79   :  { %v594_v14 = vsub.f32 %v1989_v2, %v592_v11  ;;  %129 = vrot.lane.b32.xlu0 %v127_v10, %s1946_s1  ;;  %v1424_v15 = vsub.f32 %v1994_v3, %v1422_v12 }
  0x7b   :  { %v595_v16 = vadd.f32 1.0, %v594_v14  ;;  %v1425_v17 = vadd.f32 1.0, %v1424_v15 }
  0x7d   :  { %1012 = vrot.lane.b32.xlu0 %v1010_v13, %s1946_s1  ;;  %597 = vrot.lane.b32.xlu1 %v595_v16, %s1946_s1 }
  0x81   :  { %1427 = vrot.lane.b32.xlu1 %v1425_v17, %s1946_s1  ;;  %566 = vperm.xlu0 %1877, %v1989_v2  }
  0x85   :  { %1878 = vset.pattern.permute.xlu0 %v1947_v18  ;;  %58 = vperm.xlu1 %1873, %v1977_v0  }
  0x86   :  { %39 = vperm.xlu0 %1878, %v1977_v0  }
  0x89   :  { %1874 = vset.pattern.permute.xlu1 %v1944_v4 }
  0x8a   :  { %958 = vperm.xlu0 %1878, %v1982_v1   ;;  %86 = vperm.xlu1 %1874, %v1977_v0  }
  0x8e   :  { %1880 = vset.pattern.permute.xlu0 %v1948_v19  ;;  %1875 = vset.pattern.permute.xlu1 %v1947_v18 }
  0x8f   :  { %105 = vperm.xlu0 %1880, %v1977_v0   ;;  %543 = vperm.xlu1 %1875, %v1989_v2  }
  0x93   :  { %1876 = vset.pattern.permute.xlu1 %v1945_v5  ;;  %988 = vperm.xlu0 %1880, %v1982_v1  }
  0x94   :  { %550 = vperm.xlu1 %1876, %v1989_v2  }
  0x97   :  { %1884 = vset.pattern.permute.xlu0 %v1945_v5 }
  0x98   :  { %1879 = vset.pattern.permute.xlu1 %v1948_v19  ;;  %1380 = vperm.xlu0 %1884, %v1994_v3  }
  0x99   :  { %573 = vperm.xlu1 %1879, %v1989_v2   ;;  %v2097_v2 = vrot.slane %v2052_v44, %v75_v47 }
  0x9c   :  { %1888 = vset.pattern.permute.xlu0 %v1947_v18 }
  0x9d   :  { %1881 = vset.pattern.permute.xlu1 %v1945_v5 }
  0x9e   :  { %965 = vperm.xlu1 %1881, %v1982_v1  }
  0xa2   :  { %1882 = vset.pattern.permute.xlu1 %v1944_v4 }
  0xa3   :  { %981 = vperm.xlu1 %1882, %v1982_v1  }
  0xa7   :  { %1883 = vset.pattern.permute.xlu1 %v1947_v18 }
  0xa8   :  { %1373 = vperm.xlu1 %1883, %v1994_v3  }
  0xac   :  { %1885 = vset.pattern.permute.xlu1 %v1944_v4 }
  0xad   :  { %1396 = vperm.xlu1 %1885, %v1994_v3  }
  0xb1   :  { %1886 = vset.pattern.permute.xlu1 %v1947_v18 }
  0xeb   :  { %v130_v20 = vpop.permute.xlu0 %129 }
  0xec   :  { %v132_v21 = vmul.f32 %v130_v20, %v127_v10 }
  0xee   :  { %147 = vperm.xlu1 %1886, %v132_v21  }
  0xef   :  { %v598_v22 = vpop.permute.xlu1 %597  ;;  %v1013_v23 = vpop.permute.xlu0 %1012 }
  0xf0   :  { %v600_v24 = vmul.f32 %v598_v22, %v595_v16  ;;  %v1015_v25 = vmul.f32 %v1013_v23, %v1010_v13 }
  0xf2   :  { %603 = vperm.xlu1 %1886, %v600_v24   ;;  %1018 = vperm.xlu0 %1888, %v1015_v25   ;;  %v2138_v24 = vsub.s32 4, %v2038_v38  ;;  %v2143_v25 = vsel %vm3124_vm5, 1, %v1945_v5 }
  0xf3   :  { %v1428_v28 = vpop.permute.xlu1 %1427 }
  0xf4   :  { %v1430_v29 = vmul.f32 %v1428_v28, %v1425_v17 }
  0xf6   :  { %1887 = vset.pattern.permute.xlu1 %v1948_v19  ;;  %1891 = vset.pattern.permute.xlu0 %v1949_v27  ;;  %v2129_v19 = vrot.slane %v2057_v45, %v135_v56 }
  0xf7   :  { %1403 = vperm.xlu1 %1887, %v1994_v3   ;;  %620 = vperm.xlu0 %1891, %v618_v26   ;;  %v2100_v3 = vrot.slane %v2057_v45, %v75_v47  ;;  %v2148_v26 = vsel %vm3123_vm6, 1, %v1945_v5 }
  0xfb   :  { %1889 = vset.pattern.permute.xlu1 %v1947_v18 }
  0xfc   :  { %1433 = vperm.xlu1 %1889, %v1430_v29  }
 0x100   :  { %1890 = vset.pattern.permute.xlu1 %v1949_v27  ;;  %v2036_v37 = vpop.permute.xlu0 %566  ;;  %v2153_v27 = vsel %vm3122_vm7, 1, %v1945_v5 }
 0x101   :  { %164 = vperm.xlu1 %1890, %v162_v30   ;;  %v569_v16 = vmin.f32 %v2085_v57, %v2036_v37  ;;  %v570_v17 = vmin.f32 %v2097_v2, %v2036_v37  ;;  %v571_v18 = vmin.f32 %v2100_v3, %v2036_v37 }
 0x104   :  { %v59_v34 = vpop.permute.xlu1 %58 }
 0x105   :  { %1035 = vperm.xlu1 %1890, %v1033_v31   ;;  %v40_v40 = vpop.permute.xlu0 %39  ;;  %v61_v59 = vmax.f32 %v2066_v49, %v59_v34  ;;  %v62_v63 = vmax.f32 %v2078_v54, %v59_v34  ;;  %v63_v0 = vmax.f32 %v2081_v55, %v59_v34 }
 0x106   :  { %v42_v58 = vmin.f32 %v2063_v48, %v40_v40  ;;  %v43_v61 = vmin.f32 %v2072_v52, %v40_v40  ;;  %v44_v62 = vmin.f32 %v2075_v53, %v40_v40 }
 0x108   :  { %v64_v10 = vsub.f32 %v42_v58, %v61_v59  ;;  %v65_v11 = vsub.f32 %v43_v61, %v62_v63  ;;  %v66_v12 = vsub.f32 %v44_v62, %v63_v0 }
 0x109   :  { %1450 = vperm.xlu1 %1890, %v1448_v32   ;;  %v2034_v35 = vpop.permute.xlu1 %86  ;;  %v2068_v50 = vpop.permute.xlu0 %958 }
 0x10a   :  { %v89_v13 = vmin.f32 %v2085_v57, %v2034_v35  ;;  %v90_v20 = vmin.f32 %v2097_v2, %v2034_v35  ;;  %v91_v21 = vmin.f32 %v2100_v3, %v2034_v35  ;;  %v67_v28 = vadd.f32 1.0, %v64_v10 }
 0x10b   :  { %v2155_v29 = vadd.f32 1.0, %v65_v11  ;;  %v2157_v30 = vadd.f32 1.0, %v66_v12  ;;  %v961_v47 = vmin.f32 %v2063_v48, %v2068_v50  ;;  %v962_v61 = vmin.f32 %v2072_v52, %v2068_v50 }
 0x10c   :  { %v70_v59 = vmax.f32 %v67_v28, 0.0  ;;  %v963_v62 = vmin.f32 %v2075_v53, %v2068_v50 }
 0x10d   :  { %v72_v10 = vmax.f32 %v2157_v30, 0.0 }
 0x10e   :  { %v2040_v39 = vpop.permute.xlu1 %543  ;;  %v106_v4 = vpop.permute.xlu0 %105 }
 0x10f   :  { %v108_v14 = vmax.f32 %v2090_v60, %v106_v4  ;;  %v109_v22 = vmax.f32 %v2103_v6, %v106_v4  ;;  %v110_v23 = vmax.f32 %v2106_v7, %v106_v4  ;;  %v546_v32 = vmin.f32 %v2063_v48, %v2040_v39 }
 0x110   :  { %v547_v34 = vmin.f32 %v2072_v52, %v2040_v39  ;;  %v548_v51 = vmin.f32 %v2075_v53, %v2040_v39  ;;  %v71_v4 = vmax.f32 %v2155_v29, 0.0 }
 0x111   :  { %v111_v31 = vsub.f32 %v89_v13, %v108_v14  ;;  %v112_v37 = vsub.f32 %v90_v20, %v109_v22  ;;  %v113_v5 = vsub.f32 %v91_v21, %v110_v23 }
 0x112   :  { %v989_v0 = vpop.permute.xlu0 %988 }
 0x113   :  { %v2059_v46 = vpop.permute.xlu1 %550  ;;  %v114_v63 = vadd.f32 1.0, %v111_v31  ;;  %v115_v12 = vadd.f32 1.0, %v112_v37  ;;  %v116_v13 = vadd.f32 1.0, %v113_v5  ;;  %v991_v22 = vmax.f32 %v2090_v60, %v989_v0 }
 0x114   :  { %v553_v35 = vmax.f32 %v2066_v49, %v2059_v46  ;;  %v554_v40 = vmax.f32 %v2078_v54, %v2059_v46  ;;  %v555_v56 = vmax.f32 %v2081_v55, %v2059_v46  ;;  %v992_v50 = vmax.f32 %v2103_v6, %v989_v0 }
 0x115   :  { %v117_v23 = vmax.f32 %v114_v63, 0.0  ;;  %v118_v37 = vmax.f32 %v115_v12, 0.0  ;;  %v119_v5 = vmax.f32 %v116_v13, 0.0 }
 0x116   :  { %v556_v11 = vsub.f32 %v546_v32, %v553_v35  ;;  %v557_v46 = vsub.f32 %v547_v34, %v554_v40  ;;  %v558_v20 = vsub.f32 %v548_v51, %v555_v56 }
 0x117   :  { %v2198_v63 = vmul.f32 %v117_v23, %v70_v59 }
 0x118   :  { %v574_v1 = vpop.permute.xlu1 %573  ;;  %v559_v30 = vadd.f32 1.0, %v556_v11  ;;  %v560_v32 = vadd.f32 1.0, %v557_v46  ;;  %v561_v40 = vadd.f32 1.0, %v558_v20 }
 0x119   :  { %v576_v36 = vmax.f32 %v2090_v60, %v574_v1  ;;  %v577_v41 = vmax.f32 %v2103_v6, %v574_v1  ;;  %v578_v58 = vmax.f32 %v2106_v7, %v574_v1 }
 0x11a   :  { %v563_v33 = vmax.f32 %v560_v32, 0.0  ;;  %v564_v20 = vmax.f32 %v561_v40, 0.0 }
 0x11b   :  { %v579_v39 = vsub.f32 %v569_v16, %v576_v36  ;;  %v580_v14 = vsub.f32 %v570_v17, %v577_v41  ;;  %v581_v21 = vsub.f32 %v571_v18, %v578_v58  ;;  %v993_v16 = vmax.f32 %v2106_v7, %v989_v0 }
 0x11c   :  { %v173_v0 = vrot.slane %v2143_v25, %v2138_v24 }
 0x11d   :  { %v2120_v15 = vpop.permute.xlu1 %965  ;;  %v582_v31 = vadd.f32 1.0, %v579_v39  ;;  %v583_v34 = vadd.f32 1.0, %v580_v14  ;;  %v584_v41 = vadd.f32 1.0, %v581_v21  ;;  %v1381_v14 = vpop.permute.xlu0 %1380 }
 0x11e   :  { %v968_v28 = vmax.f32 %v2066_v49, %v2120_v15  ;;  %v969_v17 = vmax.f32 %v2078_v54, %v2120_v15  ;;  %v970_v18 = vmax.f32 %v2081_v55, %v2120_v15  ;;  %v562_v15 = vmax.f32 %v559_v30, 0.0 }
 0x11f   :  { %v585_v11 = vmax.f32 %v582_v31, 0.0  ;;  %v587_v21 = vmax.f32 %v584_v41, 0.0  ;;  %vm2260_vm8 = vcmp.eq.s32.totalorder %v173_v0, 1 }
 0x120   :  { %v971_v51 = vsub.f32 %v961_v47, %v968_v28  ;;  %v972_v39 = vsub.f32 %v962_v61, %v969_v17  ;;  %v973_v46 = vsub.f32 %v963_v62, %v970_v18  ;;  %v2202_v47 = vmul.f32 %v118_v37, %v71_v4 }
 0x121   :  { %v1383_v28 = vmax.f32 %v2066_v49, %v1381_v14  ;;  %v1385_v62 = vmax.f32 %v2081_v55, %v1381_v14  ;;  %v2209_v31 = vmul.f32 %v585_v11, %v562_v15  ;;  %v2218_v32 = vmul.f32 %v587_v21, %v564_v20 }
 0x122   :  { %v982_v42 = vpop.permute.xlu1 %981  ;;  %v974_v59 = vadd.f32 1.0, %v971_v51  ;;  %v975_v30 = vadd.f32 1.0, %v972_v39  ;;  %v976_v61 = vadd.f32 1.0, %v973_v46 }
 0x123   :  { %v984_v29 = vmin.f32 %v2085_v57, %v982_v42  ;;  %v985_v35 = vmin.f32 %v2097_v2, %v982_v42  ;;  %v986_v36 = vmin.f32 %v2100_v3, %v982_v42  ;;  %v586_v42 = vmax.f32 %v583_v34, 0.0 }
 0x124   :  { %v977_v34 = vmax.f32 %v974_v59, 0.0  ;;  %v979_v37 = vmax.f32 %v976_v61, 0.0 }
 0x125   :  { %v994_v56 = vsub.f32 %v984_v29, %v991_v22  ;;  %v995_v12 = vsub.f32 %v985_v35, %v992_v50  ;;  %v996_v13 = vsub.f32 %v986_v36, %v993_v16  ;;  %v2204_v22 = vmul.f32 %v119_v5, %v72_v10 }
 0x126   :  { %v1384_v29 = vmax.f32 %v2078_v54, %v1381_v14  ;;  %v2213_v10 = vmul.f32 %v586_v42, %v563_v33 }
 0x127   :  { %v2182_v1 = vpop.permute.xlu1 %1373  ;;  %v997_v23 = vadd.f32 1.0, %v994_v56  ;;  %v998_v50 = vadd.f32 1.0, %v995_v12  ;;  %v999_v16 = vadd.f32 1.0, %v996_v13 }
 0x128   :  { %v1376_v4 = vmin.f32 %v2063_v48, %v2182_v1  ;;  %v1377_v35 = vmin.f32 %v2072_v52, %v2182_v1  ;;  %v1378_v36 = vmin.f32 %v2075_v53, %v2182_v1  ;;  %v978_v48 = vmax.f32 %v975_v30, 0.0 }
 0x129   :  { %v1000_v55 = vmax.f32 %v997_v23, 0.0  ;;  %v1001_v40 = vmax.f32 %v998_v50, 0.0  ;;  %v1002_v41 = vmax.f32 %v999_v16, 0.0 }
 0x12a   :  { %v1386_v51 = vsub.f32 %v1376_v4, %v1383_v28  ;;  %v1387_v1 = vsub.f32 %v1377_v35, %v1384_v29  ;;  %v1388_v46 = vsub.f32 %v1378_v36, %v1385_v62 }
 0x12b   :  { %v2230_v14 = vmul.f32 %v1000_v55, %v977_v34  ;;  %v2238_v23 = vmul.f32 %v1001_v40, %v978_v48  ;;  %v3164_v48 = vmov 0 }
 0x12c   :  { %v2196_v58 = vpop.permute.xlu1 %1396  ;;  %v1389_v21 = vadd.f32 1.0, %v1386_v51  ;;  %v1390_v16 = vadd.f32 1.0, %v1387_v1  ;;  %v3165_v48 = vsel %vm2260_vm8, 4294967295, %v3164_v48 }
 0x12d   :  { %v1399_v59 = vmin.f32 %v2085_v57, %v2196_v58  ;;  %v1400_v28 = vmin.f32 %v2097_v2, %v2196_v58  ;;  %v1401_v29 = vmin.f32 %v2100_v3, %v2196_v58  ;;  %v177_v58 = vrot.slane %v2148_v26, %v2138_v24  ;;  %3166 = vst [vmem:[#allocation5_spill] sm:$0xff] %v3165_v48 }
 0x12f   :  { %vm2265_vm10 = vcmp.eq.s32.totalorder %v177_v58, 1 }
 0x16d   :  { %v148_v17 = vpop.permute.xlu1 %147 }
 0x16e   :  { %v150_v18 = vadd.f32 %v148_v17, %v2109_v8  ;;  %v151_v49 = vadd.f32 %v148_v17, %v2112_v9  ;;  %v152_v54 = vadd.f32 %v148_v17, %v2129_v19 }
 0x170   :  { %v153_v33 = vsub.f32 %v150_v18, %v2198_v63  ;;  %v154_v5 = vsub.f32 %v151_v49, %v2202_v47  ;;  %v155_v56 = vsub.f32 %v152_v54, %v2204_v22  ;;  %v1391_v49 = vadd.f32 1.0, %v1388_v46 }
 0x171   :  { %v604_v15 = vpop.permute.xlu1 %603  ;;  %v1019_v11 = vpop.permute.xlu0 %1018  ;;  %v2252_v54 = vmul.f32 %v1002_v41, %v979_v37  ;;  %v1392_v37 = vmax.f32 %v1389_v21, 0.0 }
 0x172   :  { %1892 = vrcp.f32 %v153_v33  ;;  %v606_v39 = vadd.f32 %v604_v15, %v2109_v8  ;;  %v607_v52 = vadd.f32 %v604_v15, %v2112_v9  ;;  %v608_v53 = vadd.f32 %v604_v15, %v2129_v19 }
 0x173   :  { %1894 = vrcp.f32 %v154_v5  ;;  %v1021_v20 = vadd.f32 %v1019_v11, %v2109_v8  ;;  %v1022_v30 = vadd.f32 %v1019_v11, %v2112_v9  ;;  %v1023_v4 = vadd.f32 %v1019_v11, %v2129_v19 }
 0x174   :  { %v609_v42 = vsub.f32 %v606_v39, %v2209_v31  ;;  %v610_v12 = vsub.f32 %v607_v52, %v2213_v10  ;;  %v611_v13 = vsub.f32 %v608_v53, %v2218_v32  ;;  %1896 = vrcp.f32 %v155_v56 }
 0x175   :  { %v1024_v2 = vsub.f32 %v1021_v20, %v2230_v14  ;;  %v1393_v33 = vmax.f32 %v1390_v16, 0.0  ;;  %v1026_v5 = vsub.f32 %v1023_v4, %v2252_v54  ;;  %v1394_v56 = vmax.f32 %v1391_v49, 0.0 }
 0x176   :  { %1898 = vrcp.f32 %v609_v42  ;;  %v1404_v61 = vpop.permute.xlu1 %1403  ;;  %v3167_v15 = vmov 0  ;;  %v3170_v39 = vmov 0  ;;  %v3183_v4 = vmov 0 }
 0x177   :  { %1900 = vrcp.f32 %v610_v12  ;;  %v1406_v62 = vmax.f32 %v2090_v60, %v1404_v61  ;;  %v1407_v50 = vmax.f32 %v2103_v6, %v1404_v61  ;;  %v1408_v57 = vmax.f32 %v2106_v7, %v1404_v61  ;;  %v621_v6 = vpop.permute.xlu0 %620 }
 0x178   :  { %1902 = vrcp.f32 %v611_v13  ;;  %v1025_v60 = vsub.f32 %v1022_v30, %v2238_v23  ;;  %v181_v7 = vrot.slane %v2153_v27, %v2138_v24  ;;  %vm622_vm9 = vcmp.eq.s32.totalorder %v621_v6, 1 }
 0x179   :  { %v1409_v17 = vsub.f32 %v1399_v59, %v1406_v62  ;;  %v1410_v18 = vsub.f32 %v1400_v28, %v1407_v50  ;;  %v1411_v3 = vsub.f32 %v1401_v29, %v1408_v57  ;;  %1904 = vrcp.f32 %v1024_v2  ;;  %vm2283_vm12 = vmand %vm622_vm9, %vm2260_vm8 }
 0x17a   :  { %1906 = vrcp.f32 %v1025_v60  ;;  %v3168_v15 = vsel %vm2265_vm10, 4294967295, %v3167_v15  ;;  %vm2274_vm11 = vcmp.eq.s32.totalorder %v181_v7, 1  ;;  %vm2294_vm13 = vmand %vm622_vm9, %vm2265_vm10 }
 0x17b   :  { %v1412_v34 = vadd.f32 1.0, %v1409_v17  ;;  %v1413_v55 = vadd.f32 1.0, %v1410_v18  ;;  %v1414_v35 = vadd.f32 1.0, %v1411_v3  ;;  %v1434_v36 = vpop.permute.xlu1 %1433  ;;  %3169 = vst [vmem:[#allocation6_spill] sm:$0xff] %v3168_v15  ;;  %v3171_v39 = vsel %vm2274_vm11, 4294967295, %v3170_v39  ;;  %vm2302_vm14 = vmand %vm622_vm9, %vm2274_vm11 }
 0x17c   :  { %v1893_v26 = vpop.eup %1892  ;;  %v1436_v11 = vadd.f32 %v1434_v36, %v2109_v8  ;;  %3172 = vst [vmem:[#allocation7_spill] sm:$0xff] %v3171_v39  ;;  %1908 = vrcp.f32 %v1026_v5  ;;  %v1437_v12 = vadd.f32 %v1434_v36, %v2112_v9  ;;  %v1438_v8 = vadd.f32 %v1434_v36, %v2129_v19 }
 0x17d   :  { %v1895_v40 = vpop.eup %1894  ;;  %v1415_v41 = vmax.f32 %v1412_v34, 0.0  ;;  %v1416_v27 = vmax.f32 %v1413_v55, 0.0  ;;  %v1417_v51 = vmax.f32 %v1414_v35, 0.0  ;;  %v159_v19 = vmul.f32 %v1893_v26, %v2198_v63 }
 0x17e   :  { %v1897_v24 = vpop.eup %1896 }
 0x17f   :  { %v2269_v25 = vmul.f32 %v1415_v41, %v1392_v37  ;;  %v2271_v0 = vmul.f32 %v1416_v27, %v1393_v33  ;;  %v2278_v53 = vmul.f32 %v1417_v51, %v1394_v56 }
 0x180   :  { %v1899_v52 = vpop.eup %1898  ;;  %v165_v46 = vpop.permute.xlu1 %164 }
 0x181   :  { %v1901_v42 = vpop.eup %1900  ;;  %v1439_v13 = vsub.f32 %v1436_v11, %v2269_v25  ;;  %v615_v20 = vmul.f32 %v1899_v52, %v2209_v31  ;;  %v160_v31 = vmul.f32 %v1895_v40, %v2202_v47  ;;  %vm166_vm15 = vcmp.eq.s32.totalorder %v165_v46, 1 }
 0x182   :  { %v1903_v59 = vpop.eup %1902  ;;  %v616_v28 = vmul.f32 %v1901_v42, %v2213_v10  ;;  %v1440_v29 = vsub.f32 %v1437_v12, %v2271_v0  ;;  %v161_v10 = vmul.f32 %v1897_v24, %v2204_v22  ;;  %vm2317_vm0 = vmand %vm166_vm15, %vm2260_vm8  ;;  %v1441_v63 = vsub.f32 %v1438_v8, %v2278_v53 }
 0x183   :  { %v617_v30 = vmul.f32 %v1903_v59, %v2218_v32  ;;  %v2312_v61 = vsel %vm2283_vm12, %v615_v20, -1.0  ;;  %vm2329_vm1 = vmand %vm166_vm15, %vm2265_vm10  ;;  %v2335_v22 = vsel %vm2317_vm0, %v159_v19, -1.0  ;;  %1910 = vrcp.f32 %v1439_v13  ;;  %v1905_v17 = vpop.eup %1904 }
 0x184   :  { %v2324_v47 = vsel %vm2294_vm13, %v616_v28, -1.0  ;;  %v629_v32 = vrot.slane %v2312_v61, 4  ;;  %vm2344_vm2 = vmand %vm166_vm15, %vm2274_vm11  ;;  %v2350_v2 = vsel %vm2329_vm1, %v160_v31, -1.0  ;;  %v191_v49 = vrot.slane %v2335_v22, 4  ;;  %v1036_v34 = vpop.permute.xlu1 %1035  ;;  %v1907_v55 = vpop.eup %1906 }
 0x185   :  { %v2339_v57 = vsel %vm2302_vm14, %v617_v30, -1.0  ;;  %v635_v16 = vrot.slane %v2324_v47, 4  ;;  %v3184_v4 = vsel %vm2344_vm2, 4294967295, %v3183_v4  ;;  %v2356_v58 = vsel %vm2344_vm2, %v161_v10, -1.0 }
 0x186   :  { %v630_v18 = vmax.f32 %v2312_v61, %v629_v32  ;;  %v641_v3 = vrot.slane %v2339_v57, 4  ;;  %1912 = vrcp.f32 %v1440_v29  ;;  %v197_v6 = vrot.slane %v2350_v2, 4  ;;  %v1909_v41 = vpop.eup %1908 }
 0x187   :  { %v636_v60 = vmax.f32 %v2324_v47, %v635_v16  ;;  %v203_v7 = vrot.slane %v2356_v58, 4  ;;  %1914 = vrcp.f32 %v1441_v63  ;;  %v192_v26 = vmax.f32 %v2335_v22, %v191_v49 }
 0x188   :  { %v631_v35 = vrot.slane %v630_v18, 2  ;;  %v642_v36 = vmax.f32 %v2339_v57, %v641_v3  ;;  %v198_v33 = vmax.f32 %v2350_v2, %v197_v6  ;;  %v1030_v40 = vmul.f32 %v1905_v17, %v2230_v14  ;;  %v1451_v19 = vpop.permute.xlu1 %1450 }
 0x189   :  { %v637_v37 = vrot.slane %v636_v60, 2  ;;  %v204_v5 = vmax.f32 %v2356_v58, %v203_v7  ;;  %v193_v56 = vrot.slane %v192_v26, 2  ;;  %vm1037_vm3 = vcmp.eq.s32.totalorder %v1036_v34, 1 }
 0x18a   :  { %v632_v27 = vmax.f32 %v630_v18, %v631_v35  ;;  %v643_v51 = vrot.slane %v642_v36, 2  ;;  %v199_v11 = vrot.slane %v198_v33, 2  ;;  %v1031_v46 = vmul.f32 %v1907_v55, %v2238_v23  ;;  %vm2371_vm9 = vmand %vm1037_vm3, %vm2260_vm8 }
 0x18b   :  { %v638_v24 = vmax.f32 %v636_v60, %v637_v37  ;;  %v205_v52 = vrot.slane %v204_v5, 2  ;;  %v3185_v42 = vmov 0  ;;  %v194_v14 = vmax.f32 %v192_v26, %v193_v56  ;;  %vm2378_vm15 = vmand %vm1037_vm3, %vm2265_vm10 }
 0x18c   :  { %v3186_v42 = vsel %vm2371_vm9, 4294967295, %v3185_v42  ;;  %v633_v12 = vrot.slane %v632_v27, 1  ;;  %v644_v8 = vmax.f32 %v642_v36, %v643_v51  ;;  %v3187_v13 = vmov 0  ;;  %vm2397_vm7 = vmand %vm1037_vm3, %vm2274_vm11 }
 0x18d   :  { %v3188_v13 = vsel %vm2378_vm15, 4294967295, %v3187_v13  ;;  %v2384_v23 = vsel %vm2371_vm9, %v1030_v40, -1.0  ;;  %v639_v20 = vrot.slane %v638_v24, 1  ;;  %v206_v59 = vmax.f32 %v204_v5, %v205_v52  ;;  %v1911_v32 = vpop.eup %1910 }
 0x18e   :  { %v2388_v28 = vsel %vm2378_vm15, %v1031_v46, -1.0  ;;  %v2390_v31 = vmax.f32 %v632_v27, %v633_v12  ;;  %v645_v29 = vrot.slane %v644_v8, 1  ;;  %v195_v30 = vrot.slane %v194_v14, 1 }
 0x18f   :  { %v2392_v10 = vmax.f32 %v198_v33, %v199_v11  ;;  %v3189_v63 = vmov 0  ;;  %v2401_v16 = vmax.f32 %v638_v24, %v639_v20  ;;  %v207_v17 = vrot.slane %v206_v59, 1 }
 0x190   :  { %v3190_v63 = vsel %vm2397_vm7, 4294967295, %v3189_v63  ;;  %v1032_v18 = vmul.f32 %v1909_v41, %v2252_v54  ;;  %v1044_v3 = vrot.slane %v2384_v23, 4  ;;  %v2405_v49 = vmax.f32 %v644_v8, %v645_v29  ;;  %v1913_v6 = vpop.eup %1912 }
 0x191   :  { %vm647_vm6 = vcmp.eq.f32.partialorder %v2312_v61, %v2390_v31  ;;  %v1050_v60 = vrot.slane %v2388_v28, 4  ;;  %vm1452_vm5 = vcmp.eq.s32.totalorder %v1451_v19, 1  ;;  %vm648_vm3 = vcmp.eq.f32.partialorder %v2324_v47, %v2401_v16  ;;  %v1915_v55 = vpop.eup %1914 }
 0x192   :  { %v2413_v7 = vsel %vm647_vm6, %v2038_v38, 8  ;;  %v2417_v54 = vsel %vm2397_vm7, %v1032_v18, -1.0  ;;  %v1045_v34 = vmax.f32 %v2384_v23, %v1044_v3  ;;  %v2420_v35 = vmax.f32 %v194_v14, %v195_v30  ;;  %vm2437_vm6 = vmand %vm1452_vm5, %vm2260_vm8 }
 0x193   :  { %v201_v36 = vrot.slane %v2392_v10, 1  ;;  %vm649_vm4 = vcmp.eq.f32.partialorder %v2339_v57, %v2405_v49  ;;  %v2425_v26 = vmax.f32 %v206_v59, %v207_v17  ;;  %v1051_v33 = vmax.f32 %v2388_v28, %v1050_v60  ;;  %vm2457_vm8 = vmand %vm1452_vm5, %vm2274_vm11 }
 0x194   :  { %v1046_v37 = vrot.slane %v1045_v34, 2  ;;  %v2429_v5 = vsel %vm648_vm3, %v2038_v38, 8  ;;  %v3133_v40 = vrot.slane %v2413_v7, 4  ;;  %v1056_v41 = vrot.slane %v2417_v54, 4  ;;  %vm2446_vm3 = vmand %vm1452_vm5, %vm2265_vm10 }
 0x195   :  { %v1445_v27 = vmul.f32 %v1911_v32, %v2269_v25  ;;  %v3191_v51 = vmov 0  ;;  %v1052_v24 = vrot.slane %v1051_v33, 2  ;;  %v1446_v11 = vmul.f32 %v1913_v6, %v2271_v0 }
 0x196   :  { %v3192_v51 = vsel %vm2437_vm6, 4294967295, %v3191_v51  ;;  %v1047_v56 = vmax.f32 %v1045_v34, %v1046_v37  ;;  %v1447_v52 = vmul.f32 %v1915_v55, %v2278_v53  ;;  %v3193_v46 = vmov 0 }
 0x197   :  { %v3194_v46 = vsel %vm2446_vm3, 4294967295, %v3193_v46  ;;  %v2451_v25 = vsel %vm649_vm4, %v2038_v38, 8  ;;  %v1057_v12 = vmax.f32 %v2417_v54, %v1056_v41  ;;  %v3196_v8 = vmov 0 }
 0x198   :  { %3195 = vst [vmem:[#allocation8_spill] sm:$0xff] %v3194_v46  ;;  %v3197_v8 = vsel %vm2457_vm8, 4294967295, %v3196_v8  ;;  %v2463_v0 = vsel %vm2437_vm6, %v1445_v27, -1.0  ;;  %v680_v53 = vmax.f32 %v2312_v61, %v2324_v47  ;;  %v1048_v14 = vrot.slane %v1047_v56, 1 }
 0x199   :  { %v1053_v20 = vmax.f32 %v1051_v33, %v1052_v24  ;;  %v2469_v59 = vsel %vm2446_vm3, %v1446_v11, -1.0  ;;  %v2473_v19 = vsel %vm2457_vm8, %v1447_v52, -1.0  ;;  %v1058_v29 = vrot.slane %v1057_v12, 2 }
 0x19a   :  { %v1459_v30 = vrot.slane %v2463_v0, 4  ;;  %v1465_v32 = vrot.slane %v2469_v59, 4  ;;  %v1471_v17 = vrot.slane %v2473_v19, 4  ;;  %v2478_v18 = vmax.f32 %v1047_v56, %v1048_v14 }
 0x19b   :  { %v1054_v3 = vrot.slane %v1053_v20, 1  ;;  %v681_v60 = vmax.f32 %v680_v53, %v2339_v57  ;;  %v244_v6 = vmax.f32 %v2335_v22, %v2350_v2  ;;  %v1059_v34 = vmax.f32 %v1057_v12, %v1058_v29 }
 0x19c   :  { %v1460_v55 = vmax.f32 %v2463_v0, %v1459_v30  ;;  %v1466_v37 = vmax.f32 %v2469_v59, %v1465_v32  ;;  %v1472_v33 = vmax.f32 %v2473_v19, %v1471_v17  ;;  %vm1062_vm4 = vcmp.eq.f32.partialorder %v2384_v23, %v2478_v18 }
 0x19d   :  { %v2486_v41 = vmax.f32 %v1053_v20, %v1054_v3  ;;  %682 = vmax.xlane.f32.xlu1 %v681_v60  ;;  %v245_v27 = vmax.f32 %v244_v6, %v2356_v58  ;;  %v1095_v56 = vmax.f32 %v2384_v23, %v2388_v28  ;;  %v1060_v24 = vrot.slane %v1059_v34, 1 }
 0x19e   :  { %v1461_v11 = vrot.slane %v1460_v55, 2  ;;  %v1467_v52 = vrot.slane %v1466_v37, 2  ;;  %v671_v12 = vrot.slane %v2451_v25, 4  ;;  %vm213_vm10 = vcmp.eq.f32.partialorder %v2356_v58, %v2425_v26 }
 0x19f   :  { %v1473_v53 = vrot.slane %v1472_v33, 2  ;;  %246 = vmax.xlane.f32.xlu0 %v245_v27  ;;  %v1096_v14 = vmax.f32 %v1095_v56, %v2417_v54  ;;  %v2499_v20 = vmax.f32 %v1059_v34, %v1060_v24  ;;  %v2502_v29 = vsel %vm1062_vm4, %v2038_v38, 8 }
 0x1a0   :  { %v1462_v30 = vmax.f32 %v1460_v55, %v1461_v11  ;;  %v1468_v32 = vmax.f32 %v1466_v37, %v1467_v52  ;;  %v1510_v3 = vmax.f32 %v2463_v0, %v2469_v59  ;;  %v2509_v60 = vmax.f32 %v2392_v10, %v201_v36 }
 0x1a1   :  { %v1474_v17 = vmax.f32 %v1472_v33, %v1473_v53  ;;  %vm1064_vm11 = vcmp.eq.f32.partialorder %v2417_v54, %v2499_v20  ;;  %v216_v27 = vsel %vm213_vm10, %v2038_v38, 8  ;;  %vm2523_vm5 = vcmp.lt.s32.totalorder %v2413_v7, %v3133_v40 }
 0x1a2   :  { %v1463_v6 = vrot.slane %v1462_v30, 1  ;;  %v1469_v34 = vrot.slane %v1468_v32, 1  ;;  %v2515_v55 = vsel %vm1064_vm11, %v2038_v38, 8  ;;  %v1511_v33 = vmax.f32 %v1510_v3, %v2473_v19 }
 0x1a3   :  { %v1475_v37 = vrot.slane %v1474_v17, 1  ;;  %1097 = vmax.xlane.f32.xlu0 %v1096_v14  ;;  %vm212_vm4 = vcmp.eq.f32.partialorder %v2350_v2, %v2509_v60  ;;  %v3150_v36 = vrot.slane %v2515_v55, 4  ;;  %v235_v14 = vrot.slane %v216_v27, 4 }
 0x1a4   :  { %v2528_v56 = vmax.f32 %v1462_v30, %v1463_v6  ;;  %v2530_v24 = vmax.f32 %v1468_v32, %v1469_v34  ;;  %v215_v11 = vsel %vm212_vm4, %v2038_v38, 8  ;;  %vm3203_vm10 = vcmp.eq.f32.partialorder %v2335_v22, %v2420_v35 }
 0x1a5   :  { %v2533_v52 = vmax.f32 %v1474_v17, %v1475_v37  ;;  %v226_v53 = vrot.slane %v215_v11, 4  ;;  %v214_v3 = vsel %vm3203_vm10, %v2038_v38, 8  ;;  %vm2540_vm11 = vcmp.lt.s32.totalorder %v2451_v25, %v671_v12 }
 0x1a6   :  { %3200 = vst [vmem:[#allocation9_spill] sm:$0xff] %v2528_v56  ;;  %3201 = vst [vmem:[#allocation10_spill] sm:$0xff] %v2530_v24  ;;  %vm1477_vm3 = vcmp.eq.f32.partialorder %v2463_v0, %v2528_v56  ;;  %v217_v32 = vrot.slane %v214_v3, 4  ;;  %vm3206_vm4 = vcmp.eq.f32.partialorder %v2388_v28, %v2486_v41  ;;  %vm1478_vm10 = vcmp.eq.f32.partialorder %v2469_v59, %v2530_v24 }
 0x1a7   :  { %3202 = vst [vmem:[#allocation11_spill] sm:$0xff] %v2533_v52  ;;  %v2551_v17 = vsel %vm3206_vm4, %v2038_v38, 8  ;;  %vm1479_vm6 = vcmp.eq.f32.partialorder %v2473_v19, %v2533_v52  ;;  %1512 = vmax.xlane.f32.xlu0 %v1511_v33  ;;  %vm227_vm8 = vcmp.lt.s32.totalorder %v215_v11, %v226_v53  ;;  %v2558_v6 = vsel %vm1477_vm3, %v2038_v38, 8 }
 0x1a8   :  { %v2561_v34 = vsel %vm1479_vm6, %v2038_v38, 8  ;;  %v228_v37 = vsel %vm227_vm8, %v215_v11, %v226_v53  ;;  %vm236_vm15 = vcmp.lt.s32.totalorder %v216_v27, %v235_v14  ;;  %vm2566_vm4 = vcmp.lt.s32.totalorder %v2515_v55, %v3150_v36 }
 0x1a9   :  { %v229_v56 = vrot.slane %v228_v37, 2  ;;  %v237_v33 = vsel %vm236_vm15, %v216_v27, %v235_v14  ;;  %vm218_vm7 = vcmp.lt.s32.totalorder %v214_v3, %v217_v32  ;;  %v2572_v52 = vsel %vm1478_vm10, %v2038_v38, 8 }
 0x1aa   :  { %v238_v15 = vrot.slane %v237_v33, 2  ;;  %v219_v48 = vsel %vm218_vm7, %v214_v3, %v217_v32  ;;  %v662_v11 = vrot.slane %v2429_v5, 4  ;;  %v673_v39 = vsel %vm2540_vm11, %v2451_v25, %v671_v12 }
 0x1ab   :  { %vm230_vm8 = vcmp.lt.s32.totalorder %v228_v37, %v229_v56  ;;  %v220_v36 = vrot.slane %v219_v48, 2  ;;  %v3209_v24 = vrot.slane %v2502_v29, 4  ;;  %v674_v3 = vrot.slane %v673_v39, 2 }
 0x1ac   :  { %v231_v14 = vsel %vm230_vm8, %v228_v37, %v229_v56  ;;  %vm239_vm6 = vcmp.lt.s32.totalorder %v237_v33, %v238_v15  ;;  %vm663_vm7 = vcmp.lt.s32.totalorder %v2429_v5, %v662_v11  ;;  %v3212_v32 = vrot.slane %v2561_v34, 4 }
 0x1ad   :  { %vm2582_vm15 = vcmp.lt.s32.totalorder %v2502_v29, %v3209_v24  ;;  %v232_v40 = vrot.slane %v231_v14, 1  ;;  %v240_v25 = vsel %vm239_vm6, %v237_v33, %v238_v15  ;;  %vm221_vm11 = vcmp.lt.s32.totalorder %v219_v48, %v220_v36 }
 0x1ae   :  { %vm2590_vm3 = vcmp.lt.s32.totalorder %v2561_v34, %v3212_v32  ;;  %v664_v12 = vsel %vm663_vm7, %v2429_v5, %v662_v11  ;;  %v241_v24 = vrot.slane %v240_v25, 1  ;;  %v222_v45 = vsel %vm221_vm11, %v219_v48, %v220_v36  ;;  %v307_v48 = vld [vmem:[%s3118_s2] sm:$0xff] }
 0x1af   :  { %v665_v44 = vrot.slane %v664_v12, 2  ;;  %vm675_vm10 = vcmp.lt.s32.totalorder %v673_v39, %v674_v3  ;;  %vm233_vm8 = vcmp.lt.s32.totalorder %v231_v14, %v232_v40  ;;  %v223_v56 = vrot.slane %v222_v45, 1 }
 0x1b0   :  { %v676_v37 = vsel %vm675_vm10, %v673_v39, %v674_v3  ;;  %v3215_v43 = vrot.slane %v2413_v7, 4  ;;  %v234_v46 = vsel %vm233_vm8, %v231_v14, %v232_v40  ;;  %vm242_vm9 = vcmp.lt.s32.totalorder %v240_v25, %v241_v24 }
 0x1b1   :  { %vm666_vm2 = vcmp.lt.s32.totalorder %v664_v12, %v665_v44  ;;  %v677_v15 = vrot.slane %v676_v37, 1  ;;  %vm299_vm6 = vcmp.eq.s32.totalorder %v2038_v38, %v234_v46  ;;  %v243_v5 = vsel %vm242_vm9, %v240_v25, %v241_v24 }
 0x1b2   :  { %v655_v32 = vsel %vm2523_vm5, %v2413_v7, %v3215_v43  ;;  %vm224_vm7 = vcmp.lt.s32.totalorder %v222_v45, %v223_v56  ;;  %v667_v36 = vsel %vm666_vm2, %v664_v12, %v665_v44  ;;  %v3216_v39 = vrot.slane %v2558_v6, 4  ;;  %v1799_v12 = vld [vmem:[%s3118_s2 + $0x8] sm:$0xff] }
 0x1b3   :  { %v1952_v43 = vmov 1.0   ;;  %vm300_vm5 = vcmp.eq.s32.totalorder %v2038_v38, %v243_v5  ;;  %v225_v7 = vsel %vm224_vm7, %v222_v45, %v223_v56  ;;  %v668_v46 = vrot.slane %v667_v36, 1 }
 0x1b4   :  { %vm2607_vm11 = vcmp.lt.s32.totalorder %v2558_v6, %v3216_v39  ;;  %1790 = vmatprep.subr.msk.mxu0 %vm299_vm6, %v1952_v43  ;;  %vm678_vm9 = vcmp.lt.s32.totalorder %v676_v37, %v677_v15  ;;  %1843 = vmatpush3.msk.msra.mxu1 %vm300_vm5, %v1952_v43  ;;  %vm298_vm10 = vcmp.eq.s32.totalorder %v2038_v38, %v225_v7  ;;  %v656_v10 = vrot.slane %v655_v32, 2 }
 0x1b5   :  { %v679_v44 = vsel %vm678_vm9, %v676_v37, %v677_v15  ;;  %v1077_v11 = vrot.slane %v2551_v17, 4  ;;  %1791 = vmatpush1.msk.msra.mxu0 %vm298_vm10, %v1952_v43  ;;  %vm3219_vm2 = vcmask 64512   ;;  %vm669_vm8 = vcmp.lt.s32.totalorder %v667_v36, %v668_v46 }
 0x1b6   :  { %1845 = vmatmul.mubr.msk.f32.vlgmr.msra.gmra.mrb[0].mxu1 %vm3219_vm2, %v307_v48  ;;  %vm736_vm6 = vcmp.eq.s32.totalorder %v2038_v38, %v679_v44  ;;  %v3220_v14 = vrot.slane %v2515_v55, 4  ;;  %v1492_v3 = vrot.slane %v2572_v52, 4  ;;  %v3221_v40 = vmov 0.0   ;;  %vm3222_vm7 = vmmov %vm3219_vm2 }
 0x1b7   :  { %1847 = vmatprep.subr.mxu1 %v3221_v40  ;;  %1792 = vmatmul.mubr.msk.f32.vlgmr.msra.gmra.mrb[0].mxu0 %vm3222_vm7, %v307_v48  ;;  %v670_v25 = vsel %vm669_vm8, %v667_v36, %v668_v46  ;;  %vm657_vm5 = vcmp.lt.s32.totalorder %v655_v32, %v656_v10  ;;  %vm1078_vm9 = vcmp.lt.s32.totalorder %v2551_v17, %v1077_v11  ;;  %v3224_v15 = vrot.slane %v2502_v29, 4  ;;  %vm3225_vm8 = vmmov %vm3222_vm7 }
 0x1b8   :  { %v1088_v45 = vsel %vm2566_vm4, %v2515_v55, %v3220_v14  ;;  %vm735_vm10 = vcmp.eq.s32.totalorder %v2038_v38, %v670_v25  ;;  %1848 = vmatpush3.msk.msra.mxu1 %vm736_vm6, %v1952_v43  ;;  %v658_v55 = vsel %vm657_vm5, %v655_v32, %v656_v10  ;;  %vm3223_vm4 = vmmov 0   ;;  %812 = vmatprep.mubr.f32.mxu0 %v3221_v40 }
 0x1b9   :  { %v1089_v24 = vrot.slane %v1088_v45, 2  ;;  %1849 = vmatprep.mubr.msk.f32.mxu1 %vm3223_vm4, %v3221_v40  ;;  %v1079_v30 = vsel %vm1078_vm9, %v2551_v17, %v1077_v11  ;;  %1800 = vmatprep.subr.msk.mxu0 %vm735_vm10, %v1952_v43  ;;  %v659_v56 = vrot.slane %v658_v55, 1  ;;  %v1070_v5 = vsel %vm2582_vm15, %v2502_v29, %v3224_v15  ;;  %v1812_v11 = vld [vmem:[%s3118_s2 + $0x10] sm:$0xff] }
 0x1ba   :  { %v1080_v37 = vrot.slane %v1079_v30, 2  ;;  %1852 = vmatprep.subr.mxu1 %v3221_v40  ;;  %1850 = vmatmul.mubr.msk.f32.vlgmr.msra.gmra.mrb[2].mxu1 %vm3225_vm8, %v1799_v12  ;;  %v1071_v48 = vrot.slane %v1070_v5, 2  ;;  %vm1493_vm6 = vcmp.lt.s32.totalorder %v2572_v52, %v1492_v3  ;;  %v3226_v17 = vrot.slane %v2561_v34, 4 }
 0x1bb   :  { %vm1090_vm2 = vcmp.lt.s32.totalorder %v1088_v45, %v1089_v24  ;;  %vm660_vm7 = vcmp.lt.s32.totalorder %v658_v55, %v659_v56  ;;  %1854 = vmatprep.mubr.msk.f32.mxu1 %vm3223_vm4, %v3221_v40  ;;  %v1494_v29 = vsel %vm1493_vm6, %v2572_v52, %v1492_v3  ;;  %vm3227_vm6 = vcmask 64512  }
 0x1bc   :  { %v1091_v32 = vsel %vm1090_vm2, %v1088_v45, %v1089_v24  ;;  %v1503_v36 = vsel %vm2590_vm3, %v2561_v34, %v3226_v17  ;;  %vm1081_vm5 = vcmp.lt.s32.totalorder %v1079_v30, %v1080_v37  ;;  %v661_v27 = vsel %vm660_vm7, %v658_v55, %v659_v56 }
 0x1bd   :  { %v1092_v39 = vrot.slane %v1091_v32, 1  ;;  %v1082_v7 = vsel %vm1081_vm5, %v1079_v30, %v1080_v37  ;;  %vm1072_vm15 = vcmp.lt.s32.totalorder %v1070_v5, %v1071_v48  ;;  %v1495_v46 = vrot.slane %v1494_v29, 2 }
 0x1be   :  { %vm734_vm9 = vcmp.eq.s32.totalorder %v2038_v38, %v661_v27  ;;  %v1083_v44 = vrot.slane %v1082_v7, 1  ;;  %v1073_v10 = vsel %vm1072_vm15, %v1070_v5, %v1071_v48  ;;  %v1504_v14 = vrot.slane %v1503_v36, 2  ;;  %v1825_v5 = vld [vmem:[%s3118_s2 + $0x18] sm:$0xff] }
 0x1bf   :  { %vm1093_vm10 = vcmp.lt.s32.totalorder %v1091_v32, %v1092_v39  ;;  %1801 = vmatpush1.msk.msra.mxu0 %vm734_vm9, %v1952_v43  ;;  %v1074_v53 = vrot.slane %v1073_v10, 1  ;;  %vm1496_vm3 = vcmp.lt.s32.totalorder %v1494_v29, %v1495_v46  ;;  %v3228_v45 = vrot.slane %v2558_v6, 4  ;;  %vm3229_vm9 = vmmov %vm3227_vm6 }
 0x1c0   :  { %v1094_v34 = vsel %vm1093_vm10, %v1091_v32, %v1092_v39  ;;  %vm1084_vm2 = vcmp.lt.s32.totalorder %v1082_v7, %v1083_v44  ;;  %1802 = vmatmul.mubr.msk.f32.vlgmr.msra.gmra.mrb[2].mxu0 %vm3227_vm6, %v1799_v12  ;;  %v1497_v52 = vsel %vm1496_vm3, %v1494_v29, %v1495_v46  ;;  %vm1505_vm5 = vcmp.lt.s32.totalorder %v1503_v36, %v1504_v14 }
 0x1c1   :  { %vm1151_vm8 = vcmp.eq.s32.totalorder %v2038_v38, %v1094_v34  ;;  %v1485_v3 = vsel %vm2607_vm11, %v2558_v6, %v3228_v45  ;;  %v1085_v25 = vsel %vm1084_vm2, %v1082_v7, %v1083_v44  ;;  %vm1075_vm7 = vcmp.lt.s32.totalorder %v1073_v10, %v1074_v53  ;;  %1227 = vmatprep.mubr.f32.mxu0 %v3221_v40  ;;  %vm3230_vm2 = vmmov %vm3227_vm6 }
 0x1c2   :  { %1853 = vmatpush3.msk.msra.mxu1 %vm1151_vm8, %v1952_v43  ;;  %v1498_v24 = vrot.slane %v1497_v52, 1  ;;  %vm1150_vm15 = vcmp.eq.s32.totalorder %v2038_v38, %v1085_v25  ;;  %v1076_v55 = vsel %vm1075_vm7, %v1073_v10, %v1074_v53  ;;  %v1506_v12 = vsel %vm1505_vm5, %v1503_v36, %v1504_v14  ;;  %vm3231_vm5 = vmmov %vm3230_vm2 }
 0x1c3   :  { %1855 = vmatmul.mubr.msk.f32.vlgmr.msra.gmra.mrb[4].mxu1 %vm3229_vm9, %v1812_v11  ;;  %1857 = vmatprep.subr.mxu1 %v3221_v40  ;;  %v1486_v30 = vrot.slane %v1485_v3, 2  ;;  %vm1149_vm11 = vcmp.eq.s32.totalorder %v2038_v38, %v1076_v55  ;;  %v1507_v6 = vrot.slane %v1506_v12, 1  ;;  %vm3232_vm9 = vmmov %vm3230_vm2  ;;  %v1953_v55 = vmov -1.0  }
 0x1c4   :  { %1813 = vmatprep.subr.msk.mxu0 %vm1150_vm15, %v1952_v43  ;;  %vm1499_vm10 = vcmp.lt.s32.totalorder %v1497_v52, %v1498_v24  ;;  %1859 = vmatprep.mubr.msk.f32.mxu1 %vm3223_vm4, %v3221_v40 }
 0x1c5   :  { %1814 = vmatpush1.msk.msra.mxu0 %vm1149_vm11, %v1952_v43  ;;  %v1500_v33 = vsel %vm1499_vm10, %v1497_v52, %v1498_v24  ;;  %vm1487_vm3 = vcmp.lt.s32.totalorder %v1485_v3, %v1486_v30  ;;  %vm1508_vm6 = vcmp.lt.s32.totalorder %v1506_v12, %v1507_v6 }
 0x1c6   :  { %1815 = vmatmul.mubr.msk.f32.vlgmr.msra.gmra.mrb[4].mxu0 %vm3230_vm2, %v1812_v11  ;;  %vm1565_vm8 = vcmp.eq.s32.totalorder %v2038_v38, %v1500_v33  ;;  %v1488_v56 = vsel %vm1487_vm3, %v1485_v3, %v1486_v30  ;;  %v1509_v37 = vsel %vm1508_vm6, %v1506_v12, %v1507_v6 }
 0x1c7   :  { %1826 = vmatprep.subr.msk.mxu0 %vm1565_vm8, %v1952_v43  ;;  %v1489_v15 = vrot.slane %v1488_v56, 1  ;;  %1642 = vmatprep.mubr.f32.mxu0 %v3221_v40  ;;  %vm1566_vm4 = vcmp.eq.s32.totalorder %v2038_v38, %v1509_v37 }
 0x1c8   :  { %1858 = vmatpush3.msk.msra.mxu1 %vm1566_vm4, %v1952_v43 }
 0x1c9   :  { %vm1490_vm7 = vcmp.lt.s32.totalorder %v1488_v56, %v1489_v15  ;;  %1860 = vmatmul.mubr.msk.f32.vlgmr.msra.gmra.mrb[6].mxu1 %vm3231_vm5, %v1825_v5 }
 0x1ca   :  { %v1491_v32 = vsel %vm1490_vm7, %v1488_v56, %v1489_v15 }
 0x1cb   :  { %vm1564_vm15 = vcmp.eq.s32.totalorder %v2038_v38, %v1491_v32 }
 0x1cc   :  { %1827 = vmatpush1.msk.msra.mxu0 %vm1564_vm15, %v1952_v43 }
 0x1cd   :  { %1828 = vmatmul.mubr.msk.f32.vlgmr.msra.gmra.mrb[6].mxu0 %vm3232_vm9, %v1825_v5 }
 0x22a   :  { %v683_v48 = vpop.xlane.xlu1 %682 }
 0x22b   :  { %vm684_vm11 = vcmp.eq.f32.partialorder %v683_v48, 0.0 }
 0x22c   :  { %v247_v17 = vpop.xlane.xlu0 %246  ;;  %v685_v36 = vsel %vm684_vm11, 1e-05, %v683_v48 }
 0x22d   :  { %vm248_vm10 = vcmp.eq.f32.partialorder %v247_v17, 0.0  ;;  %vm686_vm3 = vcmp.eq.f32.partialorder %v2312_v61, %v685_v36  ;;  %vm687_vm2 = vcmp.eq.f32.partialorder %v2324_v47, %v685_v36  ;;  %vm688_vm8 = vcmp.eq.f32.partialorder %v2339_v57, %v685_v36 }
 0x22e   :  { %v249_v39 = vsel %vm248_vm10, 1e-05, %v247_v17  ;;  %vm689_vm6 = vmand %vm686_vm3, %vm2283_vm12 }
 0x22f   :  { %vm250_vm4 = vcmp.eq.f32.partialorder %v2335_v22, %v249_v39  ;;  %vm690_vm7 = vmand %vm687_vm2, %vm2294_vm13  ;;  %vm251_vm5 = vcmp.eq.f32.partialorder %v2350_v2, %v249_v39  ;;  %vm252_vm9 = vcmp.eq.f32.partialorder %v2356_v58, %v249_v39  ;;  %v692_v38 = vsel %vm689_vm6, 1.0, %v3221_v40 }
 0x230   :  { %v1098_v29 = vpop.xlane.xlu0 %1097  ;;  %vm691_vm15 = vmand %vm688_vm8, %vm2302_vm14  ;;  %v693_v1 = vsel %vm690_vm7, 1.0, %v3221_v40  ;;  %vm3233_vm13 = vnez %v3184_v4  ;;  %v695_v61 = vrot.slane %v692_v38, 4  ;;  %vm3235_vm8 = vnez %v3190_v63 }
 0x231   :  { %vm1099_vm11 = vcmp.eq.f32.partialorder %v1098_v29, 0.0  ;;  %vm253_vm10 = vmand %vm250_vm4, %vm2317_vm0  ;;  %v694_v21 = vsel %vm691_vm15, 1.0, %v3221_v40  ;;  %v701_v22 = vrot.slane %v693_v1, 4  ;;  %vm714_vm7 = vcmp.lt.f32.partialorder %v2401_v16, 0.3 }
 0x232   :  { %vm254_vm12 = vmand %vm251_vm5, %vm2329_vm1  ;;  %v1100_v9 = vsel %vm1099_vm11, 1e-05, %v1098_v29  ;;  %v256_v47 = vsel %vm253_vm10, 1.0, %v3221_v40  ;;  %v707_v57 = vrot.slane %v694_v21, 4  ;;  %v696_v50 = vadd.f32 %v695_v61, %v692_v38 }
 0x233   :  { %vm255_vm3 = vmand %vm252_vm9, %vm3233_vm13  ;;  %v257_v2 = vsel %vm254_vm12, 1.0, %v3221_v40  ;;  %vm1101_vm14 = vcmp.eq.f32.partialorder %v2384_v23, %v1100_v9  ;;  %v259_v58 = vrot.slane %v256_v47, 4  ;;  %vm1103_vm0 = vcmp.eq.f32.partialorder %v2417_v54, %v1100_v9 }
 0x234   :  { %v258_v62 = vsel %vm255_vm3, 1.0, %v3221_v40  ;;  %v702_v43 = vadd.f32 %v701_v22, %v693_v1  ;;  %v265_v27 = vrot.slane %v257_v2, 4  ;;  %vm3234_vm1 = vnez %v3186_v42  ;;  %vm1106_vm6 = vmand %vm1103_vm0, %vm3235_vm8  ;;  %v1513_v24 = vpop.xlane.xlu0 %1512 }
 0x235   :  { %v271_v4 = vrot.slane %v258_v62, 4  ;;  %vm1104_vm2 = vmand %vm1101_vm14, %vm3234_vm1  ;;  %v708_v7 = vadd.f32 %v707_v57, %v694_v21  ;;  %v260_v46 = vadd.f32 %v259_v58, %v256_v47  ;;  %v697_v44 = vrot.slane %v696_v50, 2 }
 0x236   :  { %v1107_v10 = vsel %vm1104_vm2, 1.0, %v3221_v40  ;;  %v703_v34 = vrot.slane %v702_v43, 2  ;;  %v266_v23 = vadd.f32 %v265_v27, %v257_v2  ;;  %vm1102_vm4 = vcmp.eq.f32.partialorder %v2388_v28, %v1100_v9 }
 0x237   :  { %v272_v53 = vadd.f32 %v271_v4, %v258_v62  ;;  %v709_v11 = vrot.slane %v708_v7, 2  ;;  %v1109_v54 = vsel %vm1106_vm6, 1.0, %v3221_v40  ;;  %v261_v42 = vrot.slane %v260_v46, 2 }
 0x238   :  { %v1110_v14 = vrot.slane %v1107_v10, 4  ;;  %v698_v52 = vadd.f32 %v697_v44, %v696_v50  ;;  %v704_v45 = vadd.f32 %v703_v34, %v702_v43  ;;  %v267_v3 = vrot.slane %v266_v23, 2  ;;  %v2771_v44 = vld [vmem:[%s3117_s0 + $0x28] sm:$0xff] }
 0x239   :  { %v273_v63 = vrot.slane %v272_v53, 2  ;;  %vm3236_vm5 = vnez %v3188_v13  ;;  %v1122_v25 = vrot.slane %v1109_v54, 4  ;;  %vm715_vm9 = vcmp.lt.f32.partialorder %v2405_v49, 0.3 }
 0x23a   :  { %vm1105_vm15 = vmand %vm1102_vm4, %vm3236_vm5  ;;  %v2727_v28 = vsel %vm714_vm7, 0.0, %v1953_v55  ;;  %v710_v12 = vadd.f32 %v709_v11, %v708_v7  ;;  %vm713_vm11 = vcmp.lt.f32.partialorder %v2390_v31, 0.3  ;;  %vm278_vm10 = vcmp.lt.f32.partialorder %v2509_v60, 0.3 }
 0x23b   :  { %vm279_vm12 = vcmp.lt.f32.partialorder %v2425_v26, 0.3  ;;  %v262_v30 = vadd.f32 %v261_v42, %v260_v46  ;;  %v1111_v6 = vadd.f32 %v1110_v14, %v1107_v10  ;;  %v699_v33 = vrot.slane %v698_v52, 1 }
 0x23c   :  { %vm277_vm13 = vcmp.lt.f32.partialorder %v2420_v35, 0.3  ;;  %v1108_v13 = vsel %vm1105_vm15, 1.0, %v3221_v40  ;;  %vm1514_vm3 = vcmp.eq.f32.partialorder %v1513_v24, 0.0  ;;  %v705_v56 = vrot.slane %v704_v45, 1 }
 0x23d   :  { %v268_v37 = vadd.f32 %v267_v3, %v266_v23  ;;  %v274_v15 = vadd.f32 %v273_v63, %v272_v53  ;;  %v1123_v5 = vadd.f32 %v1122_v25, %v1109_v54  ;;  %v718_v32 = vsel %vm715_vm9, 0.0, %v1953_v55  ;;  %v1940_v23 = vld [vmem:[%s3117_s0 + $0x10] sm:$0xff]  ;;  %v2820_v25 = vld [vmem:[%s3117_s0 + $0x18] sm:$0xff] }
 0x23e   :  { %v711_v48 = vrot.slane %v710_v12, 1  ;;  %v716_v17 = vsel %vm713_vm11, 0.0, %v1953_v55  ;;  %v2739_v36 = vsel %vm278_vm10, 0.0, %v1953_v55  ;;  %v263_v39 = vrot.slane %v262_v30, 1 }
 0x23f   :  { %v1112_v29 = vrot.slane %v1111_v6, 2  ;;  %v1116_v38 = vrot.slane %v1108_v13, 4  ;;  %v1515_v1 = vsel %vm1514_vm3, 1e-05, %v1513_v24  ;;  %v700_v21 = vadd.f32 %v699_v33, %v698_v52 }
 0x240   :  { %v282_v9 = vsel %vm279_vm12, 0.0, %v1953_v55  ;;  %v280_v61 = vsel %vm277_vm13, 0.0, %v1953_v55  ;;  %vm1128_vm14 = vcmp.lt.f32.partialorder %v2478_v18, 0.3  ;;  %v706_v47 = vadd.f32 %v705_v56, %v704_v45  ;;  %v1941_v45 = vld [vmem:[%s3117_s0] sm:$0xff] }
 0x241   :  { %vm725_vm0 = vcmp.ge.f32.partialorder %v2390_v31, 0.7  ;;  %v269_v22 = vrot.slane %v268_v37, 1  ;;  %v275_v57 = vrot.slane %v274_v15, 1  ;;  %v1124_v2 = vrot.slane %v1123_v5, 2 }
 0x242   :  { %vm726_vm1 = vcmp.ge.f32.partialorder %v2401_v16, 0.7  ;;  %v712_v62 = vadd.f32 %v711_v48, %v710_v12  ;;  %vm1129_vm2 = vcmp.lt.f32.partialorder %v2486_v41, 0.3  ;;  %vm1130_vm8 = vcmp.lt.f32.partialorder %v2499_v20, 0.3 }
 0x243   :  { %vm1518_vm6 = vcmp.eq.f32.partialorder %v2473_v19, %v1515_v1  ;;  %vm727_vm4 = vcmp.ge.f32.partialorder %v2405_v49, 0.7  ;;  %v264_v58 = vadd.f32 %v263_v39, %v262_v30  ;;  %v1113_v50 = vadd.f32 %v1112_v29, %v1111_v6  ;;  %v3245_v39 = vld [vmem:[#allocation2_spill] sm:$0xff]  ;;  %v3247_v49 = vld [vmem:[#allocation3_spill] sm:$0xff] }
 0x244   :  { %v1117_v43 = vadd.f32 %v1116_v38, %v1108_v13  ;;  %vm1516_vm7 = vcmp.eq.f32.partialorder %v2463_v0, %v1515_v1  ;;  %vm719_vm5 = vcmp.gt.f32.partialorder %v700_v21, 0.0  ;;  %vm289_vm15 = vcmp.ge.f32.partialorder %v2420_v35, 0.7 }
 0x245   :  { %v2759_v27 = vsel %vm1128_vm14, 0.0, %v1953_v55  ;;  %vm1517_vm9 = vcmp.eq.f32.partialorder %v2469_v59, %v1515_v1  ;;  %vm720_vm11 = vcmp.gt.f32.partialorder %v706_v47, 0.0  ;;  %v270_v4 = vadd.f32 %v269_v22, %v268_v37  ;;  %v2833_v37 = vld [vmem:[%s3117_s0 + $0x20] sm:$0xff]  ;;  %v3249_v22 = vld [vmem:[#allocation4_spill] sm:$0xff] }
 0x246   :  { %v276_v19 = vadd.f32 %v275_v57, %v274_v15  ;;  %v1125_v7 = vadd.f32 %v1124_v2, %v1123_v5  ;;  %vm3237_vm10 = vnez %v3197_v8  ;;  %vm721_vm13 = vcmp.gt.f32.partialorder %v712_v62, 0.0 }
 0x247   :  { %vm2764_vm12 = vmand %vm1518_vm6, %vm3237_vm10  ;;  %vm290_vm3 = vcmp.ge.f32.partialorder %v2509_v60, 0.7  ;;  %v2777_v10 = vsel %vm1129_vm2, 0.0, %v1953_v55  ;;  %v2782_v8 = vsel %vm1130_vm8, 0.0, %v1953_v55  ;;  %vm3240_vm14 = vnez %v3192_v51  ;;  %v3243_v51 = vld [vmem:[#allocation8_spill] sm:$0xff] }
 0x248   :  { %vm2788_vm6 = vmand %vm1516_vm7, %vm3240_vm14  ;;  %v2795_v53 = vrot.slane %v1940_v23, 6  ;;  %v722_v11 = vsel %vm719_vm5, 1.0, %v716_v17  ;;  %vm291_vm2 = vcmp.ge.f32.partialorder %v2425_v26, 0.7  ;;  %vm283_vm8 = vcmp.gt.f32.partialorder %v264_v58, 0.0 }
 0x249   :  { %v1114_v54 = vrot.slane %v1113_v50, 1  ;;  %v1118_v42 = vrot.slane %v1117_v43, 2  ;;  %vm3244_vm10 = vnez %v3243_v51  ;;  %v723_v0 = vsel %vm720_vm11, 1.0, %v2727_v28 }
 0x24a   :  { %vm1520_vm7 = vmand %vm1517_vm9, %vm3244_vm10  ;;  %v1524_v14 = vsel %vm2764_vm12, 1.0, %v3221_v40  ;;  %v2809_v52 = vrot.slane %v2771_v44, 6  ;;  %v2814_v3 = vrot.slane %v1941_v45, 6  ;;  %v724_v63 = vsel %vm721_vm13, 1.0, %v718_v32 }
 0x24b   :  { %vm284_vm5 = vcmp.gt.f32.partialorder %v270_v4, 0.0  ;;  %vm285_vm9 = vcmp.gt.f32.partialorder %v276_v19, 0.0  ;;  %v1126_v59 = vrot.slane %v1125_v7, 1  ;;  %v728_v24 = vsel %vm725_vm0, 1.0, %v722_v11 }
 0x24c   :  { %v286_v28 = vsel %vm283_vm8, 1.0, %v280_v61  ;;  %v1522_v12 = vsel %vm2788_vm6, 1.0, %v3221_v40  ;;  %v1523_v30 = vsel %vm1520_vm7, 1.0, %v3221_v40  ;;  %v729_v6 = vsel %vm726_vm1, 1.0, %v723_v0 }
 0x24d   :  { %v1115_v33 = vadd.f32 %v1114_v54, %v1113_v50  ;;  %v1119_v13 = vadd.f32 %v1118_v42, %v1117_v43  ;;  %v1537_v56 = vrot.slane %v1524_v14, 4  ;;  %v730_v31 = vsel %vm727_vm4, 1.0, %v724_v63 }
 0x24e   :  { %v287_v15 = vsel %vm284_vm5, 1.0, %v2739_v36  ;;  %v288_v5 = vsel %vm285_vm9, 1.0, %v282_v9  ;;  %vm1140_vm0 = vcmp.ge.f32.partialorder %v2478_v18, 0.7  ;;  %v2840_v40 = vrot.slane %v2820_v25, 6  ;;  %v1942_v36 = vld [vmem:[%s3117_s0 + $0x8] sm:$0xff] }
 0x24f   :  { %v292_v16 = vsel %vm289_vm15, 1.0, %v286_v28  ;;  %v1127_v32 = vadd.f32 %v1126_v59, %v1125_v7  ;;  %v1525_v48 = vrot.slane %v1522_v12, 4  ;;  %v1531_v17 = vrot.slane %v1523_v30, 4 }
 0x250   :  { %vm3246_vm1 = vcmp.gt.f32.partialorder %v3245_v39, 0.5  ;;  %vm3248_vm4 = vcmp.gt.f32.partialorder %v3247_v49, 0.5  ;;  %vm1142_vm11 = vcmp.ge.f32.partialorder %v2499_v20, 0.7  ;;  %v2856_v1 = vrot.slane %v1942_v36, 6 }
 0x251   :  { %v2846_v29 = vsel %vm3246_vm1, %v728_v24, -1.0  ;;  %v2850_v38 = vsel %vm3248_vm4, %v729_v6, -1.0  ;;  %v2859_v35 = vrot.slane %v2833_v37, 6  ;;  %v293_v21 = vsel %vm290_vm3, 1.0, %v287_v15  ;;  %vm3251_vm13 = vmmov %vm3246_vm1 }
 0x252   :  { %v1120_v9 = vrot.slane %v1119_v13, 1  ;;  %vm1134_vm15 = vcmp.gt.f32.partialorder %v1115_v33, 0.0  ;;  %v1538_v61 = vadd.f32 %v1537_v56, %v1524_v14  ;;  %vm3250_vm12 = vcmp.gt.f32.partialorder %v3249_v22, 0.5  ;;  %vm3252_vm3 = vmmov %vm3248_vm4 }
 0x253   :  { %v2865_v57 = vsel %vm3250_vm12, %v730_v31, -1.0  ;;  %v294_v2 = vsel %vm291_vm2, 1.0, %v288_v5  ;;  %v2871_v62 = vsel %vm3251_vm13, %v292_v16, -1.0  ;;  %vm1136_vm14 = vcmp.gt.f32.partialorder %v1127_v32, 0.0  ;;  %vm3253_vm6 = vmmov %vm3250_vm12 }
 0x254   :  { %v2873_v60 = vadd.f32 %v1525_v48, %v1522_v12  ;;  %v2875_v4 = vadd.f32 %v1531_v17, %v1523_v30  ;;  %v2879_v46 = vsel %vm3252_vm3, %v293_v21, -1.0  ;;  %v1137_v26 = vsel %vm1134_vm15, 1.0, %v2759_v27  ;;  %vm3260_vm4 = vmmov %vm3253_vm6 }
 0x255   :  { %v2884_v11 = vsel %vm3253_vm6, %v294_v2, -1.0  ;;  %v2886_v54 = vadd.f32 %v1120_v9, %v1119_v13  ;;  %v1539_v42 = vrot.slane %v1538_v61, 2  ;;  %v1139_v14 = vsel %vm1136_vm14, 1.0, %v2782_v8  ;;  %vm3262_vm15 = vmmov %vm3251_vm13 }
 0x256   :  { %v2891_v27 = vsel %vm1140_vm0, 1.0, %v1137_v26  ;;  %v1527_v28 = vrot.slane %v2873_v60, 2  ;;  %v1533_v12 = vrot.slane %v2875_v4, 2  ;;  %v2898_v8 = vsel %vm1142_vm11, 1.0, %v1139_v14 }
 0x257   :  { %v2900_v31 = vadd.f32 %v1539_v42, %v1538_v61  ;;  %vm516_vm2 = vcmask 1041408   ;;  %vm520_vm8 = vcmask 1042432   ;;  %vm527_vm10 = vcmask 1043456  }
 0x258   :  { %vm531_vm7 = vcmask 1044480   ;;  %vm1135_vm1 = vcmp.gt.f32.partialorder %v2886_v54, 0.0  ;;  %vm1141_vm12 = vcmp.ge.f32.partialorder %v2486_v41, 0.7 }
 0x289   :  { %v449_v47 = vpop.f32.mrb[0].mxu1 }
 0x28a   :  { %v458_v58 = vrot.slane %v449_v47, 6  ;;  %v378_v50 = vpop.f32.mrb[0].mxu0  ;;  %v1846_v43 = vpop.f32.mrb[1].mxu1 }
 0x28b   :  { %v456_v19 = vrot.slane %v378_v50, 6  ;;  %v380_v7 = vpop.f32.mrb[1].mxu0 }
 0x28c   :  { %v464_v34 = vsub.f32 %v449_v47, %v458_v58  ;;  %v457_v23 = vrot.slane %v380_v7, 6 }
 0x28d   :  { %v462_v51 = vsub.f32 %v378_v50, %v456_v19  ;;  %v885_v0 = vpop.f32.mrb[2].mxu1 }
 0x28e   :  { %v467_v45 = vadd.f32 1.0, %v464_v34  ;;  %v463_v63 = vsub.f32 %v380_v7, %v457_v23  ;;  %v894_v59 = vrot.slane %v885_v0, 6  ;;  %v1851_v24 = vpop.f32.mrb[3].mxu1 }
 0x28f   :  { %v465_v30 = vadd.f32 1.0, %v462_v51 }
 0x290   :  { %v470_v6 = vmul.f32 0.5, %v467_v45  ;;  %v509_v33 = vmul.f32 %v2809_v52, %v467_v45  ;;  %v466_v13 = vadd.f32 1.0, %v463_v63  ;;  %v900_v56 = vsub.f32 %v885_v0, %v894_v59 }
 0x291   :  { %v468_v15 = vmul.f32 0.5, %v465_v30  ;;  %v507_v18 = vmul.f32 %v2840_v40, %v465_v30 }
 0x292   :  { %v476_v5 = vrot.slane %v470_v6, 2  ;;  %1916 = vlog2.f32 %v509_v33  ;;  %v469_v16 = vmul.f32 0.5, %v466_v13  ;;  %v508_v32 = vmul.f32 %v2859_v35, %v466_v13 }
 0x293   :  { %v814_v48 = vpop.f32.mrb[2].mxu0  ;;  %v474_v17 = vrot.slane %v468_v15, 2  ;;  %1918 = vlog2.f32 %v507_v18  ;;  %v903_v36 = vadd.f32 1.0, %v900_v56 }
 0x294   :  { %v892_v21 = vrot.slane %v814_v48, 6  ;;  %v816_v9 = vpop.f32.mrb[3].mxu0  ;;  %v482_v2 = vadd.f32 %v476_v5, %v449_v47  ;;  %v475_v20 = vrot.slane %v469_v16, 2  ;;  %1920 = vlog2.f32 %v508_v32 }
 0x295   :  { %v893_v61 = vrot.slane %v816_v9, 6  ;;  %v480_v43 = vadd.f32 %v474_v17, %v378_v50  ;;  %v906_v19 = vmul.f32 0.5, %v903_v36  ;;  %v927_v26 = vmul.f32 %v903_v36, %v2809_v52 }
 0x296   :  { %v1300_v58 = vpop.f32.mrb[4].mxu1  ;;  %v898_v34 = vsub.f32 %v814_v48, %v892_v21  ;;  %v494_v42 = vsub.f32 %v482_v2, %v2795_v53  ;;  %v481_v51 = vadd.f32 %v475_v20, %v380_v7 }
 0x297   :  { %v1856_v23 = vpop.f32.mrb[5].mxu1  ;;  %v899_v14 = vsub.f32 %v816_v9, %v893_v61  ;;  %v1309_v45 = vrot.slane %v1300_v58, 6  ;;  %v492_v47 = vsub.f32 %v480_v43, %v2814_v3  ;;  %v912_v63 = vrot.slane %v906_v19, 2 }
 0x298   :  { %1922 = vlog2.f32 %v927_v26  ;;  %v901_v59 = vadd.f32 1.0, %v898_v34  ;;  %v497_v50 = vmul.f32 %v494_v42, %v2771_v44  ;;  %v493_v30 = vsub.f32 %v481_v51, %v2856_v1 }
 0x299   :  { %v2907_v24 = vpop.f32.mrb[4].mxu0  ;;  %v902_v6 = vadd.f32 1.0, %v899_v14  ;;  %v1315_v33 = vsub.f32 %v1300_v58, %v1309_v45  ;;  %v495_v7 = vmul.f32 %v492_v47, %v2820_v25  ;;  %v918_v56 = vadd.f32 %v912_v63, %v885_v0 }
 0x29a   :  { %v2911_v13 = vpop.f32.mrb[5].mxu0  ;;  %v904_v15 = vmul.f32 0.5, %v901_v59  ;;  %v925_v18 = vmul.f32 %v901_v59, %v2840_v40  ;;  %v496_v5 = vmul.f32 %v493_v30, %v2833_v37  ;;  %v1307_v2 = vrot.slane %v2907_v24, 6 }
 0x29b   :  { %v905_v16 = vmul.f32 0.5, %v902_v6  ;;  %v926_v32 = vmul.f32 %v902_v6, %v2859_v35  ;;  %v1318_v17 = vadd.f32 1.0, %v1315_v33  ;;  %v921_v36 = vsub.f32 %v918_v56, %v2795_v53 }
 0x29c   :  { %v910_v21 = vrot.slane %v904_v15, 2  ;;  %1924 = vlog2.f32 %v925_v18  ;;  %v2919_v20 = vpop.f32.mrb[6].mxu1  ;;  %v1917_v61 = vpop.eup %1916  ;;  %v1313_v14 = vsub.f32 %v2907_v24, %v1307_v2 }
 0x29d   :  { %v911_v43 = vrot.slane %v905_v16, 2  ;;  %1926 = vlog2.f32 %v926_v32  ;;  %v1321_v0 = vmul.f32 0.5, %v1318_v17  ;;  %v1342_v19 = vmul.f32 %v1318_v17, %v2809_v52  ;;  %v1861_v26 = vpop.f32.mrb[7].mxu1  ;;  %v1919_v34 = vpop.eup %1918 }
 0x29e   :  { %v515_v23 = vmul.f32 0.6931472, %v1917_v61  ;;  %v924_v42 = vmul.f32 %v921_v36, %v2771_v44  ;;  %v916_v51 = vadd.f32 %v910_v21, %v814_v48  ;;  %v1921_v45 = vpop.eup %1920  ;;  %v511_v47 = vmul.f32 0.6931472, %v1919_v34  ;;  %v3254_v36 = vld [vmem:[#allocation7_spill] sm:$0xff] }
 0x29f   :  { %v917_v63 = vadd.f32 %v911_v43, %v816_v9  ;;  %v1327_v59 = vrot.slane %v1321_v0, 2  ;;  %1928 = vlog2.f32 %v1342_v19  ;;  %v513_v33 = vmul.f32 0.6931472, %v1921_v45  ;;  %v3256_v0 = vld [vmem:[#allocation5_spill] sm:$0xff] }
 0x2a0   :  { %v2924_v30 = vpop.f32.mrb[6].mxu0  ;;  %v519_v6 = vsel %vm516_vm2, %v497_v50, %v515_v23  ;;  %v919_v56 = vsub.f32 %v916_v51, %v2814_v3  ;;  %v1316_v15 = vadd.f32 1.0, %v1313_v14  ;;  %v517_v48 = vsel %vm516_vm2, %v495_v7, %v511_v47 }
 0x2a1   :  { %v2928_v18 = vpop.f32.mrb[7].mxu0  ;;  %v523_v16 = vsel %vm520_vm8, %v519_v6, %v515_v23  ;;  %v920_v32 = vsub.f32 %v917_v63, %v2856_v1  ;;  %v1333_v17 = vadd.f32 %v1327_v59, %v1300_v58  ;;  %vm3255_vm5 = vnez %v3254_v36  ;;  %v3258_v23 = vld [vmem:[#allocation6_spill] sm:$0xff] }
 0x2a2   :  { %v1923_v9 = vpop.eup %1922  ;;  %v526_v21 = vsel %vm3255_vm5, %v523_v16, 0.0  ;;  %v521_v2 = vsel %vm520_vm8, %v517_v48, %v511_v47  ;;  %v518_v50 = vsel %vm516_vm2, %v496_v5, %v513_v33  ;;  %v922_v61 = vmul.f32 %v919_v56, %v2820_v25 }
 0x2a3   :  { %v530_v43 = vsel %vm527_vm10, %v526_v21, %v2884_v11  ;;  %vm3257_vm9 = vnez %v3256_v0  ;;  %v522_v7 = vsel %vm520_vm8, %v518_v50, %v513_v33  ;;  %v933_v26 = vmul.f32 0.6931472, %v1923_v9 }
 0x2a4   :  { %v524_v19 = vsel %vm3257_vm9, %v521_v2, 0.0  ;;  %v534_v58 = vsel %vm531_vm7, %v530_v43, 0.0  ;;  %vm3259_vm0 = vnez %v3258_v23  ;;  %v923_v5 = vmul.f32 %v920_v32, %v2833_v37 }
 0x2a5   :  { %v528_v34 = vsel %vm527_vm10, %v524_v19, %v2871_v62  ;;  %v525_v51 = vsel %vm3259_vm0, %v522_v7, 0.0  ;;  %537 = vst [vmem:[%s3119_s3 + $0x10] sm:$0xff] %v534_v58  ;;  %v936_v45 = vsel %vm516_vm2, %v924_v42, %v933_v26  ;;  %v1336_v47 = vsub.f32 %v1333_v17, %v2795_v53 }
 0x2a6   :  { %v532_v11 = vsel %vm531_vm7, %v528_v34, 0.0  ;;  %v529_v14 = vsel %vm527_vm10, %v525_v51, %v2879_v46  ;;  %v1925_v63 = vpop.eup %1924  ;;  %v939_v59 = vsel %vm520_vm8, %v936_v45, %v933_v26  ;;  %v1319_v6 = vmul.f32 0.5, %v1316_v15 }
 0x2a7   :  { %535 = vst [vmem:[%s3119_s3] sm:$0xff] %v532_v11  ;;  %v533_v62 = vsel %vm531_vm7, %v529_v14, 0.0  ;;  %v1340_v33 = vmul.f32 %v1316_v15, %v2840_v40  ;;  %v1927_v56 = vpop.eup %1926  ;;  %v942_v46 = vsel %vm3255_vm5, %v939_v59, 0.0  ;;  %v929_v42 = vmul.f32 0.6931472, %v1925_v63 }
 0x2a8   :  { %536 = vst [vmem:[%s3119_s3 + $0x8] sm:$0xff] %v533_v62  ;;  %v1339_v16 = vmul.f32 %v1336_v47, %v2771_v44  ;;  %v1308_v48 = vrot.slane %v2911_v13, 6  ;;  %v945_v32 = vsel %vm527_vm10, %v942_v46, %v2865_v57  ;;  %v931_v17 = vmul.f32 0.6931472, %v1927_v56 }
 0x2a9   :  { %v1325_v9 = vrot.slane %v1319_v6, 2  ;;  %1930 = vlog2.f32 %v1340_v33  ;;  %v1929_v15 = vpop.eup %1928  ;;  %v948_v21 = vsel %vm531_vm7, %v945_v32, 0.0  ;;  %v934_v2 = vsel %vm516_vm2, %v922_v61, %v929_v42 }
 0x2aa   :  { %v1314_v50 = vsub.f32 %v2911_v13, %v1308_v48  ;;  %v1724_v43 = vrot.slane %v2919_v20, 6  ;;  %1807 = vst [vmem:[%s3119_s3 + $0x28] sm:$0xff] %v948_v21  ;;  %v937_v57 = vsel %vm520_vm8, %v934_v2, %v929_v42  ;;  %v935_v19 = vsel %vm516_vm2, %v923_v5, %v931_v17  ;;  %v3261_v2 = vld [vmem:[#allocation11_spill] sm:$0xff] }
 0x2ab   :  { %v1348_v7 = vmul.f32 0.6931472, %v1929_v15  ;;  %v1331_v26 = vadd.f32 %v1325_v9, %v2907_v24  ;;  %v940_v58 = vsel %vm3257_vm9, %v937_v57, 0.0  ;;  %v938_v61 = vsel %vm520_vm8, %v935_v19, %v931_v17 }
 0x2ac   :  { %v1317_v34 = vadd.f32 1.0, %v1314_v50  ;;  %v1730_v51 = vsub.f32 %v2919_v20, %v1724_v43  ;;  %v1148_v11 = vsel %vm3260_vm4, %v2898_v8, -1.0  ;;  %v943_v14 = vsel %vm527_vm10, %v940_v58, %v2846_v29 }
 0x2ad   :  { %v941_v5 = vsel %vm3259_vm0, %v938_v61, 0.0  ;;  %v1351_v24 = vsel %vm516_vm2, %v1339_v16, %v1348_v7  ;;  %v946_v45 = vsel %vm531_vm7, %v943_v14, 0.0  ;;  %v1334_v59 = vsub.f32 %v1331_v26, %v2814_v3 }
 0x2ae   :  { %v944_v47 = vsel %vm527_vm10, %v941_v5, %v2850_v38  ;;  %v1354_v63 = vsel %vm520_vm8, %v1351_v24, %v1348_v7  ;;  %v1320_v62 = vmul.f32 0.5, %v1317_v34  ;;  %1805 = vst [vmem:[%s3119_s3 + $0x18] sm:$0xff] %v946_v45  ;;  %v1341_v6 = vmul.f32 %v1317_v34, %v2859_v35 }
 0x2af   :  { %v947_v8 = vsel %vm531_vm7, %v944_v47, 0.0  ;;  %v1357_v29 = vsel %vm3255_vm5, %v1354_v63, 0.0  ;;  %v1733_v56 = vadd.f32 1.0, %v1730_v51  ;;  %v1722_v46 = vrot.slane %v2924_v30, 6 }
 0x2b0   :  { %1806 = vst [vmem:[%s3119_s3 + $0x20] sm:$0xff] %v947_v8  ;;  %v1360_v38 = vsel %vm527_vm10, %v1357_v29, %v1148_v11  ;;  %v1326_v33 = vrot.slane %v1320_v62, 2  ;;  %v1528_v42 = vadd.f32 %v1527_v28, %v2873_v60  ;;  %1932 = vlog2.f32 %v1341_v6  ;;  %v3263_v6 = vld [vmem:[#allocation9_spill] sm:$0xff] }
 0x2b1   :  { %v1363_v16 = vsel %vm531_vm7, %v1360_v38, 0.0  ;;  %v1723_v48 = vrot.slane %v2928_v18, 6  ;;  %v1541_v32 = vrot.slane %v2900_v31, 1  ;;  %v1736_v17 = vmul.f32 0.5, %v1733_v56 }
 0x2b2   :  { %1820 = vst [vmem:[%s3119_s3 + $0x40] sm:$0xff] %v1363_v16  ;;  %v1757_v9 = vmul.f32 %v1733_v56, %v2809_v52  ;;  %v1728_v15 = vsub.f32 %v2924_v30, %v1722_v46  ;;  %vm1545_vm11 = vcmp.lt.f32.partialorder %v3261_v2, 0.3  ;;  %v1534_v60 = vadd.f32 %v1533_v12, %v2875_v4 }
 0x2b3   :  { %v1931_v21 = vpop.eup %1930  ;;  %v1337_v28 = vmul.f32 %v1334_v59, %v2820_v25  ;;  %v1729_v50 = vsub.f32 %v2928_v18, %v1723_v48  ;;  %v1332_v57 = vadd.f32 %v1326_v33, %v2911_v13  ;;  %v1742_v19 = vrot.slane %v1736_v17, 2 }
 0x2b4   :  { %v1344_v43 = vmul.f32 0.6931472, %v1931_v21  ;;  %1934 = vlog2.f32 %v1757_v9  ;;  %v1138_v52 = vsel %vm1135_vm1, 1.0, %v2777_v10  ;;  %v1146_v7 = vsel %vm3262_vm15, %v2891_v27, -1.0 }
 0x2b5   :  { %v1731_v26 = vadd.f32 1.0, %v1728_v15  ;;  %v1732_v58 = vadd.f32 1.0, %v1729_v50  ;;  %v1529_v4 = vrot.slane %v1528_v42, 1  ;;  %v1542_v12 = vadd.f32 %v1541_v32, %v2900_v31 }
 0x2b6   :  { %v1349_v61 = vsel %vm516_vm2, %v1337_v28, %v1344_v43  ;;  %v1748_v34 = vadd.f32 %v1742_v19, %v2919_v20  ;;  %v1535_v10 = vrot.slane %v1534_v60, 1  ;;  %v1335_v27 = vsub.f32 %v1332_v57, %v2856_v1 }
 0x2b7   :  { %v1352_v13 = vsel %vm520_vm8, %v1349_v61, %v1344_v43  ;;  %v1734_v51 = vmul.f32 0.5, %v1731_v26  ;;  %v1755_v11 = vmul.f32 %v1731_v26, %v2840_v40  ;;  %v1735_v54 = vmul.f32 0.5, %v1732_v58 }
 0x2b8   :  { %v1355_v14 = vsel %vm3257_vm9, %v1352_v13, 0.0  ;;  %v1756_v5 = vmul.f32 %v1732_v58, %v2859_v35  ;;  %vm1551_vm13 = vcmp.gt.f32.partialorder %v1542_v12, 0.0  ;;  %v1144_v47 = vsel %vm1141_vm12, 1.0, %v1138_v52 }
 0x2b9   :  { %v1358_v31 = vsel %vm527_vm10, %v1355_v14, %v1146_v7  ;;  %v1740_v24 = vrot.slane %v1734_v51, 2  ;;  %1936 = vlog2.f32 %v1755_v11  ;;  %v1741_v45 = vrot.slane %v1735_v54, 2 }
 0x2ba   :  { %v1361_v20 = vsel %vm531_vm7, %v1358_v31, 0.0  ;;  %1938 = vlog2.f32 %v1756_v5  ;;  %v1933_v40 = vpop.eup %1932  ;;  %v1548_v63 = vsel %vm1545_vm11, 0.0, %v1953_v55  ;;  %v1530_v62 = vadd.f32 %v1529_v4, %v1528_v42  ;;  %v3264_v42 = vld [vmem:[#allocation10_spill] sm:$0xff] }
 0x2bb   :  { %1818 = vst [vmem:[%s3119_s3 + $0x30] sm:$0xff] %v1361_v20  ;;  %v1751_v35 = vsub.f32 %v1748_v34, %v2795_v53  ;;  %v1536_v8 = vadd.f32 %v1535_v10, %v1534_v60  ;;  %v1338_v41 = vmul.f32 %v1335_v27, %v2833_v37  ;;  %v1346_v29 = vmul.f32 0.6931472, %v1933_v40 }
 0x2bc   :  { %v1746_v59 = vadd.f32 %v1740_v24, %v2924_v30  ;;  %vm1543_vm14 = vcmp.lt.f32.partialorder %v3263_v6, 0.3  ;;  %v1554_v38 = vsel %vm1551_vm13, 1.0, %v1548_v63  ;;  %v1747_v33 = vadd.f32 %v1741_v45, %v2928_v18 }
 0x2bd   :  { %v1147_v46 = vsel %vm3252_vm3, %v1144_v47, -1.0  ;;  %vm1544_vm6 = vcmp.lt.f32.partialorder %v3264_v42, 0.3  ;;  %vm1557_vm1 = vcmp.ge.f32.partialorder %v3261_v2, 0.7  ;;  %v1350_v53 = vsel %vm516_vm2, %v1338_v41, %v1346_v29 }
 0x2be   :  { %v1935_v56 = vpop.eup %1934  ;;  %vm1549_vm4 = vcmp.gt.f32.partialorder %v1530_v62, 0.0  ;;  %v1353_v16 = vsel %vm520_vm8, %v1350_v53, %v1346_v29  ;;  %v1754_v30 = vmul.f32 %v1751_v35, %v2771_v44  ;;  %vm1550_vm11 = vcmp.gt.f32.partialorder %v1536_v8, 0.0 }
 0x2bf   :  { %v1763_v48 = vmul.f32 0.6931472, %v1935_v56  ;;  %v1560_v32 = vsel %vm1557_vm1, 1.0, %v1554_v38  ;;  %v1356_v18 = vsel %vm3259_vm0, %v1353_v16, 0.0  ;;  %v1749_v17 = vsub.f32 %v1746_v59, %v2814_v3 }
 0x2c0   :  { %v1546_v9 = vsel %vm1543_vm14, 0.0, %v1953_v55  ;;  %v1359_v15 = vsel %vm527_vm10, %v1356_v18, %v1147_v46  ;;  %v1750_v2 = vsub.f32 %v1747_v33, %v2856_v1  ;;  %v1547_v44 = vsel %vm1544_vm6, 0.0, %v1953_v55  ;;  %vm3267_vm14 = vmmov %vm3252_vm3 }
 0x2c1   :  { %v1766_v21 = vsel %vm516_vm2, %v1754_v30, %v1763_v48  ;;  %v1552_v60 = vsel %vm1549_vm4, 1.0, %v1546_v9  ;;  %v1362_v28 = vsel %vm531_vm7, %v1359_v15, 0.0  ;;  %vm1555_vm15 = vcmp.ge.f32.partialorder %v3263_v6, 0.7 }
 0x2c2   :  { %v1769_v50 = vsel %vm520_vm8, %v1766_v21, %v1763_v48  ;;  %v1553_v3 = vsel %vm1550_vm11, 1.0, %v1547_v44  ;;  %vm3265_vm12 = vcmp.gt.f32.partialorder %v3249_v22, 0.5  ;;  %1819 = vst [vmem:[%s3119_s3 + $0x38] sm:$0xff] %v1362_v28  ;;  %vm1556_vm13 = vcmp.ge.f32.partialorder %v3264_v42, 0.7 }
 0x2c3   :  { %v1937_v43 = vpop.eup %1936  ;;  %v1563_v57 = vsel %vm3265_vm12, %v1560_v32, -1.0  ;;  %v1772_v1 = vsel %vm3255_vm5, %v1769_v50, 0.0  ;;  %v1752_v52 = vmul.f32 %v1749_v17, %v2820_v25  ;;  %v1558_v26 = vsel %vm1555_vm15, 1.0, %v1552_v60 }
 0x2c4   :  { %v1939_v55 = vpop.eup %1938  ;;  %v1775_v19 = vsel %vm527_vm10, %v1772_v1, %v1563_v57  ;;  %v1759_v7 = vmul.f32 0.6931472, %v1937_v43  ;;  %v1753_v22 = vmul.f32 %v1750_v2, %v2833_v37  ;;  %v1559_v12 = vsel %vm1556_vm13, 1.0, %v1553_v3 }
 0x2c5   :  { %v1778_v58 = vsel %vm531_vm7, %v1775_v19, 0.0  ;;  %v1761_v4 = vmul.f32 0.6931472, %v1939_v55  ;;  %vm3266_vm5 = vcmp.gt.f32.partialorder %v3245_v39, 0.5  ;;  %v1562_v51 = vsel %vm3267_vm14, %v1559_v12, -1.0 }
 0x2c6   :  { %1833 = vst [vmem:[%s3119_s3 + $0x58] sm:$0xff] %v1778_v58  ;;  %v1764_v36 = vsel %vm516_vm2, %v1752_v52, %v1759_v7  ;;  %v1561_v25 = vsel %vm3266_vm5, %v1558_v26, -1.0 }
 0x2c7   :  { %v1767_v61 = vsel %vm520_vm8, %v1764_v36, %v1759_v7  ;;  %v1765_v34 = vsel %vm516_vm2, %v1753_v22, %v1761_v4 }
 0x2c8   :  { %v1770_v13 = vsel %vm3257_vm9, %v1767_v61, 0.0  ;;  %v1768_v37 = vsel %vm520_vm8, %v1765_v34, %v1761_v4 }
 0x2c9   :  { %v1773_v11 = vsel %vm527_vm10, %v1770_v13, %v1561_v25  ;;  %v1771_v54 = vsel %vm3259_vm0, %v1768_v37, 0.0 }
 0x2ca   :  { %v1776_v10 = vsel %vm531_vm7, %v1773_v11, 0.0  ;;  %v1774_v14 = vsel %vm527_vm10, %v1771_v54, %v1562_v51 }
 0x2cb   :  { %1831 = vst [vmem:[%s3119_s3 + $0x48] sm:$0xff] %v1776_v10  ;;  %v1777_v39 = vsel %vm531_vm7, %v1774_v14, 0.0 }
 0x2cc   :  { %1832 = vst [vmem:[%s3119_s3 + $0x50] sm:$0xff] %v1777_v39 }

</bundles_post_ra>
